<compile_context>
chip_gen: v7x
topology: tpu7x:2x2x1
jax: 0.10.0
libtpu: 0.0.40
codegen_flags: <defaults>
</compile_context>

<pallas_src>
import functools

import jax
import jax.numpy as jnp
from jax import lax
from jax.experimental import pallas as pl
from jax.experimental.pallas import tpu as pltpu


# ----------------------------------------------------------------------------
# Fused kernel: bi-LSTM -> attention pooling -> label mixing
# ----------------------------------------------------------------------------
def _label_layer_kernel(T, S, F, H, A, o_whh, o_b, o_wo, o_uo,
                        x_ref, lab_ref, slab_ref, out_ref,
                        proj_scr, lstm_scr):
    """
    x_ref    : (N, 2H)       rows matched against class embeddings
    lab_ref  : (T*S, 2F)     row t*S+s = [label[s, t, :] | label[s, T-1-t, :]]
    slab_ref : (R, W)        packed weights (wih2 | whh_blockdiag | bias | w_omega | u_omega)
    out_ref  : (N, 2H)
    proj_scr : (T*S, 8H)     staged gate pre-activations (input part + bias)
    lstm_scr : (T*S, 2H)     staged bi-LSTM outputs, time-major, time-aligned fwd|bwd
    """
    f32 = jnp.float32
    H2, H4, H6, H8 = 2 * H, 4 * H, 6 * H, 8 * H
    F2 = 2 * F
    N = x_ref.shape[0]

    # ---- 1. One batched input projection for all T steps x both directions ----
    wih = slab_ref[0:F2, 0:H8]                                       # (2F, 8H)
    bias = slab_ref[o_b:o_b + 1, 0:H8]                               # (1, 8H), b_ih+b_hh folded
    proj_scr[...] = jnp.dot(lab_ref[...], wih,
                            preferred_element_type=f32) + bias       # (T*S, 8H)

    # ---- 2. Fused fwd/bwd LSTM recurrence: ONE block-diag matmul per step ----
    # gate column packing: [i_f i_b | f_f f_b | o_f o_b | g_f g_b]
    whh = slab_ref[o_whh:o_whh + H2, 0:H8]                           # (2H, 8H) block-diagonal
    h_cat = jnp.zeros((S, H2), f32)                                  # [h_f | h_b]
    c_cat = jnp.zeros((S, H2), f32)                                  # [c_f | c_b]
    for t in range(T):                                               # static unroll; serial by nature
        tb = T - 1 - t
        # single expression: proj + dot -> MXU accumulate-friendly (v7x MRB)
        g = proj_scr[t * S:(t + 1) * S, :] + jnp.dot(
            h_cat, whh, preferred_element_type=f32)                  # (S, 8H)
        sig = jax.nn.sigmoid(g[:, 0:H6])                             # one sigmoid: i|f|o both dirs
        gat = jnp.tanh(g[:, H6:H8])                                  # one tanh: g both dirs
        c_cat = sig[:, H2:H4] * c_cat + sig[:, 0:H2] * gat
        h_cat = sig[:, H4:H6] * jnp.tanh(c_cat)
        # stage time-aligned outputs (fwd at time t, bwd at time T-1-t); off the serial path
        lstm_scr[t * S:(t + 1) * S, 0:H] = h_cat[:, 0:H]
        lstm_scr[tb * S:(tb + 1) * S, H:H2] = h_cat[:, H:H2]

    # ---- 3. self_attention_net pooling (single batched matmul over all T*S rows) ----
    wo = slab_ref[o_wo:o_wo + H2, 0:A]                               # (2H, A)
    uo = slab_ref[o_uo:o_uo + 1, 0:A]                                # (1, A)
    lstm_all = lstm_scr[...]                                         # (T*S, 2H)
    at = jnp.tanh(jnp.dot(lstm_all, wo, preferred_element_type=f32)) # (T*S, A)
    scores = jnp.sum(at * uo, axis=1, keepdims=True)                 # (T*S, 1)
    sc = jnp.concatenate([scores[t * S:(t + 1) * S, :]
                          for t in range(T)], axis=1)                # (S, T)
    sc = sc - jnp.max(sc, axis=1, keepdims=True)                     # stable softmax
    e = jnp.exp(sc)
    alphas = e * pl.reciprocal(jnp.sum(e, axis=1, keepdims=True), approx=True)   # (S, T)

    label_feat = lstm_all[0:S, :] * alphas[:, 0:1]
    for t in range(1, T):
        label_feat = label_feat + lstm_all[t * S:(t + 1) * S, :] * alphas[:, t:t + 1]   # (S, 2H)

    # ---- 4. sen_attention_label ----
    m = jnp.tanh(lax.dot_general(x_ref[...], label_feat,
                                 (((1,), (1,)), ((), ())),
                                 preferred_element_type=f32))        # (N, S)
    m = m - jnp.max(m, axis=1, keepdims=True)                        # stable softmax
    e2 = jnp.exp(m)
    a = e2 * pl.reciprocal(jnp.sum(e2, axis=1, keepdims=True), approx=True)      # (N, S)

    # PyTorch a.reshape([class_num, -1]): row-major flatten + regroup, entirely in vregs
    # (general for any N, S; no scratch buffers, no store->load hazard).
    a_flat = jnp.concatenate([a[n:n + 1, :] for n in range(N)], axis=1)              # (1, N*S)
    a_reshape = jnp.concatenate([a_flat[:, i * N:(i + 1) * N]
                                 for i in range(S)], axis=0)                         # (S, N)

    # finalx = label_feat.T @ a_reshape, returned transposed == contract class dim of both
    out = lax.dot_general(a_reshape, label_feat, (((0,), (0,)), ((), ())),
                          preferred_element_type=f32)                # (N, 2H)
    out_ref[...] = out.astype(out_ref.dtype)


# ----------------------------------------------------------------------------
# Wrapper: single pallas_call; wrapper-side layout plumbing only (fused by XLA)
# ----------------------------------------------------------------------------
def _label_layer_forward(x, label, params):
    """x: (N, 2H), label: (S, T, F) batch-first.  Returns (N, 2H)."""
    S, T, F = label.shape
    H = params["whh_f"].shape[1]
    A = params["w_omega"].shape[1]
    N = x.shape[0]
    H2, H4, H8 = 2 * H, 4 * H, 8 * H
    W = max(H8, A)                                   # slab lane width (8H == 128 when H == 16)
    f32 = jnp.float32

    # Labels: time-major, with the time-reversed copy appended along features so one
    # matmul yields both directions' (correctly time-indexed) gate pre-activations.
    lab_t = jnp.transpose(label, (1, 0, 2)).astype(f32)                      # (T, S, F)
    lab2 = jnp.concatenate([lab_t, lab_t[::-1]], axis=-1).reshape(T * S, 2 * F)   # (T*S, 2F)

    # Gate-permuted, direction-fused weights. PyTorch gate order along 4H is [i, f, g, o];
    # packed column order is [i_f i_b | f_f f_b | o_f o_b | g_f g_b].
    def split_gates(w):                              # slices last axis (4H) -> (i, f, g, o)
        return (w[..., 0:H], w[..., H:H2], w[..., H2:3 * H], w[..., 3 * H:H4])

    iF, fF, gF, oF = split_gates(params["wih_f"].T.astype(f32))              # (F, H) each
    iB, fB, gB, oB = split_gates(params["wih_b"].T.astype(f32))
    zF = jnp.zeros((F, H), f32)
    wih_fwd_rows = jnp.concatenate([iF, zF, fF, zF, oF, zF, gF, zF], axis=1)  # (F, 8H)
    wih_bwd_rows = jnp.concatenate([zF, iB, zF, fB, zF, oB, zF, gB], axis=1)  # (F, 8H)
    wih2 = jnp.concatenate([wih_fwd_rows, wih_bwd_rows], axis=0)              # (2F, 8H)

    hiF, hfF, hgF, hoF = split_gates(params["whh_f"].T.astype(f32))           # (H, H) each
    hiB, hfB, hgB, hoB = split_gates(params["whh_b"].T.astype(f32))
    zH = jnp.zeros((H, H), f32)
    whh_f_rows = jnp.concatenate([hiF, zH, hfF, zH, hoF, zH, hgF, zH], axis=1)  # (H, 8H)
    whh_b_rows = jnp.concatenate([zH, hiB, zH, hfB, zH, hoB, zH, hgB], axis=1)  # (H, 8H)
    whh_bd = jnp.concatenate([whh_f_rows, whh_b_rows], axis=0)                  # (2H, 8H)

    bf = (params["bih_f"] + params["bhh_f"]).astype(f32)                      # (4H,)
    bb = (params["bih_b"] + params["bhh_b"]).astype(f32)
    biF, bfF, bgF, boF = split_gates(bf)
    biB, bfB, bgB, boB = split_gates(bb)
    b_packed = jnp.concatenate([biF, biB, bfF, bfB, boF, boB, bgF, bgB]).reshape(1, H8)

    wo = params["w_omega"].astype(f32)                                        # (2H, A)
    uo = params["u_omega"].astype(f32).reshape(1, A)                          # (1, A)

    # Pack everything into ONE lane-dense slab (sections aligned to 8 sublanes).
    def pad_block(m):
        return jnp.pad(m, ((0, (-m.shape[0]) % 8), (0, W - m.shape[1])))

    sections = [wih2, whh_bd, b_packed, wo, uo]
    offs, rows, padded = [], 0, []
    for msec in sections:
        offs.append(rows)
        p = pad_block(msec)
        padded.append(p)
        rows += p.shape[0]
    slab = jnp.concatenate(padded, axis=0)                                    # (R, W)
    _, o_whh, o_b, o_wo, o_uo = offs

    kernel = functools.partial(_label_layer_kernel, T, S, F, H, A,
                               o_whh, o_b, o_wo, o_uo)
    return pl.pallas_call(
        kernel,
        out_shape=jax.ShapeDtypeStruct((N, H2), f32),
        scratch_shapes=[
            pltpu.VMEM((T * S, H8), f32),     # staged gate pre-activations
            pltpu.VMEM((T * S, H2), f32),     # staged bi-LSTM outputs
        ],
    )(x.astype(f32), lab2, slab)


label_layer_forward = jax.jit(_label_layer_forward)


# ----------------------------------------------------------------------------
# Pure-JAX reference (mirrors the PyTorch module line by line)
# ----------------------------------------------------------------------------
def ref_forward(x, label, params):
    S, T, F = label.shape
    H = params["whh_f"].shape[1]

    def run_dir(wih, whh, bih, bhh, reverse):
        h = jnp.zeros((S, H), jnp.float32)
        c = jnp.zeros((S, H), jnp.float32)
        outs = [None] * T
        ts = range(T - 1, -1, -1) if reverse else range(T)
        for t in ts:
            gates = label[:, t, :] @ wih.T + bih + h @ whh.T + bhh
            i = jax.nn.sigmoid(gates[:, :H])
            f = jax.nn.sigmoid(gates[:, H:2 * H])
            g = jnp.tanh(gates[:, 2 * H:3 * H])
            o = jax.nn.sigmoid(gates[:, 3 * H:])
            c = f * c + i * g
            h = o * jnp.tanh(c)
            outs[t] = h
        return jnp.stack(outs, axis=1)                       # (S, T, H)

    out_f = run_dir(params["wih_f"], params["whh_f"], params["bih_f"], params["bhh_f"], False)
    out_b = run_dir(params["wih_b"], params["whh_b"], params["bih_b"], params["bhh_b"], True)
    lstm_out = jnp.concatenate([out_f, out_b], axis=-1)      # (S, T, 2H)

    D = 2 * H
    flat = lstm_out.reshape(-1, D)
    attn_tanh = jnp.tanh(flat @ params["w_omega"])
    scores = attn_tanh @ params["u_omega"].reshape(-1, 1)
    exps = jnp.exp(scores).reshape(-1, T)
    alphas = exps / jnp.sum(exps, axis=1, keepdims=True)
    label_feat = jnp.sum(lstm_out * alphas[:, :, None], axis=1)   # (S, 2H)

    m = jnp.tanh(x @ label_feat.T)
    e = jnp.exp(m)
    a = e / jnp.sum(e, axis=1, keepdims=True)
    a_reshape = a.reshape(S, -1)
    finalx = label_feat.T @ a_reshape                        # (2H, N)
    return finalx.T


# ----------------------------------------------------------------------------
if __name__ == "__main__":
    num_class, embed_dim, hidden, max_sen, atten_size = 4, 32, 16, 8, 16
    n_rows = 8

    key = jax.random.PRNGKey(0)
    ks = jax.random.split(key, 12)
    s = 0.1
    params = dict(
        wih_f=jax.random.normal(ks[0], (4 * hidden, embed_dim), jnp.float32) * s,
        whh_f=jax.random.normal(ks[1], (4 * hidden, hidden), jnp.float32) * s,
        bih_f=jax.random.normal(ks[2], (4 * hidden,), jnp.float32) * s,
        bhh_f=jax.random.normal(ks[3], (4 * hidden,), jnp.float32) * s,
        wih_b=jax.random.normal(ks[4], (4 * hidden, embed_dim), jnp.float32) * s,
        whh_b=jax.random.normal(ks[5], (4 * hidden, hidden), jnp.float32) * s,
        bih_b=jax.random.normal(ks[6], (4 * hidden,), jnp.float32) * s,
        bhh_b=jax.random.normal(ks[7], (4 * hidden,), jnp.float32) * s,
        w_omega=jax.random.normal(ks[8], (2 * hidden, atten_size), jnp.float32) * s,
        u_omega=jax.random.normal(ks[9], (atten_size,), jnp.float32) * s,
    )
    x = jax.random.normal(ks[10], (n_rows, 2 * hidden), jnp.float32)
    label = jax.random.normal(ks[11], (num_class, max_sen, embed_dim), jnp.float32)

    out = jax.block_until_ready(label_layer_forward(x, label, params))
    assert out.shape == (n_rows, 2 * hidden)

    ref = ref_forward(x, label, params)
    if not bool(jnp.allclose(out, ref, rtol=5e-2, atol=5e-2)):
        raise AssertionError("Pallas result does not match pure-JAX reference")

    print("KERNEL_OK")
</pallas_src>

<mosaic_0001>
module attributes {stable_mosaic.version = 11 : i64} {
  func.func @_label_layer_kernel(%arg0: memref<8x32xf32, #tpu.memory_space<vmem>>, %arg1: memref<32x64xf32, #tpu.memory_space<vmem>>, %arg2: memref<144x128xf32, #tpu.memory_space<vmem>>, %arg3: memref<8x32xf32, #tpu.memory_space<vmem>>, %arg4: memref<32x128xf32, #tpu.memory_space<vmem>>, %arg5: memref<32x32xf32, #tpu.memory_space<vmem>>) attributes {dimension_semantics = [], scalar_prefetch = 0 : i64, scratch_operands = 2 : i64, tpu.core_type = #tpu.core_type<tc>} {
    %c0 = arith.constant 0 : index
    %c0_0 = arith.constant 0 : index
    %0 = vector.load %arg2[%c0, %c0_0] : memref<144x128xf32, #tpu.memory_space<vmem>>, vector<64x128xf32>
    %c96 = arith.constant 96 : index
    %c0_1 = arith.constant 0 : index
    %1 = vector.load %arg2[%c96, %c0_1] : memref<144x128xf32, #tpu.memory_space<vmem>>, vector<1x128xf32>
    %c0_2 = arith.constant 0 : index
    %c0_3 = arith.constant 0 : index
    %2 = vector.load %arg1[%c0_2, %c0_3] : memref<32x64xf32, #tpu.memory_space<vmem>>, vector<32x64xf32>
    %cst = arith.constant dense<0.000000e+00> : vector<32x128xf32>
    %3 = tpu.matmul %2, %0, %cst {dimension_numbers = #tpu.dot_dimension_numbers<[1], [0], [0], [1], [0, 0, 1, 1], [], []>} : vector<32x64xf32>, vector<64x128xf32>, vector<32x128xf32> -> vector<32x128xf32>
    %4 = vector.broadcast %1 : vector<1x128xf32> to vector<32x128xf32>
    %5 = arith.addf %3, %4 : vector<32x128xf32>
    %c0_4 = arith.constant 0 : index
    %c0_5 = arith.constant 0 : index
    %6 = vector.load %arg4[%c0_4, %c0_5] : memref<32x128xf32, #tpu.memory_space<vmem>>, vector<32x128xf32>
    tpu.vector_store %arg4[%c0_4, %c0_5], %5 {strides = array<i32>} : memref<32x128xf32, #tpu.memory_space<vmem>>, vector<32x128xf32>,
    %c64 = arith.constant 64 : index
    %c0_6 = arith.constant 0 : index
    %7 = vector.load %arg2[%c64, %c0_6] : memref<144x128xf32, #tpu.memory_space<vmem>>, vector<32x128xf32>
    %cst_7 = arith.constant 0.000000e+00 : f32
    %8 = vector.broadcast %cst_7 : f32 to vector<4x32xf32>
    %cst_8 = arith.constant 0.000000e+00 : f32
    %9 = vector.broadcast %cst_8 : f32 to vector<4x32xf32>
    %c0_9 = arith.constant 0 : index
    %c0_10 = arith.constant 0 : index
    %10 = vector.load %arg4[%c0_9, %c0_10] : memref<32x128xf32, #tpu.memory_space<vmem>>, vector<4x128xf32>
    %cst_11 = arith.constant dense<0.000000e+00> : vector<4x128xf32>
    %11 = tpu.matmul %8, %7, %cst_11 {dimension_numbers = #tpu.dot_dimension_numbers<[1], [0], [0], [1], [0, 0, 1, 1], [], []>} : vector<4x32xf32>, vector<32x128xf32>, vector<4x128xf32> -> vector<4x128xf32>
    %12 = arith.addf %10, %11 : vector<4x128xf32>
    %13 = vector.extract_strided_slice %12 {offsets = [0, 0], sizes = [4, 96], strides = [1, 1]} : vector<4x128xf32> to vector<4x96xf32>
    %14 = arith.negf %13 : vector<4x96xf32>
    %15 = math.exp %14 : vector<4x96xf32>
    %cst_12 = arith.constant 1.000000e+00 : f32
    %16 = vector.broadcast %cst_12 : f32 to vector<4x96xf32>
    %17 = arith.addf %16, %15 : vector<4x96xf32>
    %18 = arith.divf %16, %17 : vector<4x96xf32>
    %19 = vector.extract_strided_slice %12 {offsets = [0, 96], sizes = [4, 32], strides = [1, 1]} : vector<4x128xf32> to vector<4x32xf32>
    %20 = math.tanh %19 : vector<4x32xf32>
    %21 = vector.extract_strided_slice %18 {offsets = [0, 32], sizes = [4, 32], strides = [1, 1]} : vector<4x96xf32> to vector<4x32xf32>
    %22 = arith.mulf %21, %9 : vector<4x32xf32>
    %23 = vector.extract_strided_slice %18 {offsets = [0, 0], sizes = [4, 32], strides = [1, 1]} : vector<4x96xf32> to vector<4x32xf32>
    %24 = arith.mulf %23, %20 : vector<4x32xf32>
    %25 = arith.addf %22, %24 : vector<4x32xf32>
    %26 = vector.extract_strided_slice %18 {offsets = [0, 64], sizes = [4, 32], strides = [1, 1]} : vector<4x96xf32> to vector<4x32xf32>
    %27 = math.tanh %25 : vector<4x32xf32>
    %28 = arith.mulf %26, %27 : vector<4x32xf32>
    %29 = vector.extract_strided_slice %28 {offsets = [0, 0], sizes = [4, 16], strides = [1, 1]} : vector<4x32xf32> to vector<4x16xf32>
    %c0_13 = arith.constant 0 : index
    %c0_14 = arith.constant 0 : index
    %30 = vector.load %arg5[%c0_13, %c0_14] : memref<32x32xf32, #tpu.memory_space<vmem>>, vector<4x16xf32>
    tpu.vector_store %arg5[%c0_13, %c0_14], %29 {strides = array<i32>} : memref<32x32xf32, #tpu.memory_space<vmem>>, vector<4x16xf32>,
    %31 = vector.extract_strided_slice %28 {offsets = [0, 16], sizes = [4, 16], strides = [1, 1]} : vector<4x32xf32> to vector<4x16xf32>
    %c28 = arith.constant 28 : index
    %c16 = arith.constant 16 : index
    %32 = vector.load %arg5[%c28, %c16] : memref<32x32xf32, #tpu.memory_space<vmem>>, vector<4x16xf32>
    tpu.vector_store %arg5[%c28, %c16], %31 {strides = array<i32>} : memref<32x32xf32, #tpu.memory_space<vmem>>, vector<4x16xf32>,
    %c4 = arith.constant 4 : index
    %c0_15 = arith.constant 0 : index
    %33 = vector.load %arg4[%c4, %c0_15] : memref<32x128xf32, #tpu.memory_space<vmem>>, vector<4x128xf32>
    %cst_16 = arith.constant dense<0.000000e+00> : vector<4x128xf32>
    %34 = tpu.matmul %28, %7, %cst_16 {dimension_numbers = #tpu.dot_dimension_numbers<[1], [0], [0], [1], [0, 0, 1, 1], [], []>} : vector<4x32xf32>, vector<32x128xf32>, vector<4x128xf32> -> vector<4x128xf32>
    %35 = arith.addf %33, %34 : vector<4x128xf32>
    %36 = vector.extract_strided_slice %35 {offsets = [0, 0], sizes = [4, 96], strides = [1, 1]} : vector<4x128xf32> to vector<4x96xf32>
    %37 = arith.negf %36 : vector<4x96xf32>
    %38 = math.exp %37 : vector<4x96xf32>
    %cst_17 = arith.constant 1.000000e+00 : f32
    %39 = vector.broadcast %cst_17 : f32 to vector<4x96xf32>
    %40 = arith.addf %39, %38 : vector<4x96xf32>
    %41 = arith.divf %39, %40 : vector<4x96xf32>
    %42 = vector.extract_strided_slice %35 {offsets = [0, 96], sizes = [4, 32], strides = [1, 1]} : vector<4x128xf32> to vector<4x32xf32>
    %43 = math.tanh %42 : vector<4x32xf32>
    %44 = vector.extract_strided_slice %41 {offsets = [0, 32], sizes = [4, 32], strides = [1, 1]} : vector<4x96xf32> to vector<4x32xf32>
    %45 = arith.mulf %44, %25 : vector<4x32xf32>
    %46 = vector.extract_strided_slice %41 {offsets = [0, 0], sizes = [4, 32], strides = [1, 1]} : vector<4x96xf32> to vector<4x32xf32>
    %47 = arith.mulf %46, %43 : vector<4x32xf32>
    %48 = arith.addf %45, %47 : vector<4x32xf32>
    %49 = vector.extract_strided_slice %41 {offsets = [0, 64], sizes = [4, 32], strides = [1, 1]} : vector<4x96xf32> to vector<4x32xf32>
    %50 = math.tanh %48 : vector<4x32xf32>
    %51 = arith.mulf %49, %50 : vector<4x32xf32>
    %52 = vector.extract_strided_slice %51 {offsets = [0, 0], sizes = [4, 16], strides = [1, 1]} : vector<4x32xf32> to vector<4x16xf32>
    %c4_18 = arith.constant 4 : index
    %c0_19 = arith.constant 0 : index
    %53 = vector.load %arg5[%c4_18, %c0_19] : memref<32x32xf32, #tpu.memory_space<vmem>>, vector<4x16xf32>
    tpu.vector_store %arg5[%c4_18, %c0_19], %52 {strides = array<i32>} : memref<32x32xf32, #tpu.memory_space<vmem>>, vector<4x16xf32>,
    %54 = vector.extract_strided_slice %51 {offsets = [0, 16], sizes = [4, 16], strides = [1, 1]} : vector<4x32xf32> to vector<4x16xf32>
    %c24 = arith.constant 24 : index
    %c16_20 = arith.constant 16 : index
    %55 = vector.load %arg5[%c24, %c16_20] : memref<32x32xf32, #tpu.memory_space<vmem>>, vector<4x16xf32>
    tpu.vector_store %arg5[%c24, %c16_20], %54 {strides = array<i32>} : memref<32x32xf32, #tpu.memory_space<vmem>>, vector<4x16xf32>,
    %c8 = arith.constant 8 : index
    %c0_21 = arith.constant 0 : index
    %56 = vector.load %arg4[%c8, %c0_21] : memref<32x128xf32, #tpu.memory_space<vmem>>, vector<4x128xf32>
    %cst_22 = arith.constant dense<0.000000e+00> : vector<4x128xf32>
    %57 = tpu.matmul %51, %7, %cst_22 {dimension_numbers = #tpu.dot_dimension_numbers<[1], [0], [0], [1], [0, 0, 1, 1], [], []>} : vector<4x32xf32>, vector<32x128xf32>, vector<4x128xf32> -> vector<4x128xf32>
    %58 = arith.addf %56, %57 : vector<4x128xf32>
    %59 = vector.extract_strided_slice %58 {offsets = [0, 0], sizes = [4, 96], strides = [1, 1]} : vector<4x128xf32> to vector<4x96xf32>
    %60 = arith.negf %59 : vector<4x96xf32>
    %61 = math.exp %60 : vector<4x96xf32>
    %cst_23 = arith.constant 1.000000e+00 : f32
    %62 = vector.broadcast %cst_23 : f32 to vector<4x96xf32>
    %63 = arith.addf %62, %61 : vector<4x96xf32>
    %64 = arith.divf %62, %63 : vector<4x96xf32>
    %65 = vector.extract_strided_slice %58 {offsets = [0, 96], sizes = [4, 32], strides = [1, 1]} : vector<4x128xf32> to vector<4x32xf32>
    %66 = math.tanh %65 : vector<4x32xf32>
    %67 = vector.extract_strided_slice %64 {offsets = [0, 32], sizes = [4, 32], strides = [1, 1]} : vector<4x96xf32> to vector<4x32xf32>
    %68 = arith.mulf %67, %48 : vector<4x32xf32>
    %69 = vector.extract_strided_slice %64 {offsets = [0, 0], sizes = [4, 32], strides = [1, 1]} : vector<4x96xf32> to vector<4x32xf32>
    %70 = arith.mulf %69, %66 : vector<4x32xf32>
    %71 = arith.addf %68, %70 : vector<4x32xf32>
    %72 = vector.extract_strided_slice %64 {offsets = [0, 64], sizes = [4, 32], strides = [1, 1]} : vector<4x96xf32> to vector<4x32xf32>
    %73 = math.tanh %71 : vector<4x32xf32>
    %74 = arith.mulf %72, %73 : vector<4x32xf32>
    %75 = vector.extract_strided_slice %74 {offsets = [0, 0], sizes = [4, 16], strides = [1, 1]} : vector<4x32xf32> to vector<4x16xf32>
    %c8_24 = arith.constant 8 : index
    %c0_25 = arith.constant 0 : index
    %76 = vector.load %arg5[%c8_24, %c0_25] : memref<32x32xf32, #tpu.memory_space<vmem>>, vector<4x16xf32>
    tpu.vector_store %arg5[%c8_24, %c0_25], %75 {strides = array<i32>} : memref<32x32xf32, #tpu.memory_space<vmem>>, vector<4x16xf32>,
    %77 = vector.extract_strided_slice %74 {offsets = [0, 16], sizes = [4, 16], strides = [1, 1]} : vector<4x32xf32> to vector<4x16xf32>
    %c20 = arith.constant 20 : index
    %c16_26 = arith.constant 16 : index
    %78 = vector.load %arg5[%c20, %c16_26] : memref<32x32xf32, #tpu.memory_space<vmem>>, vector<4x16xf32>
    tpu.vector_store %arg5[%c20, %c16_26], %77 {strides = array<i32>} : memref<32x32xf32, #tpu.memory_space<vmem>>, vector<4x16xf32>,
    %c12 = arith.constant 12 : index
    %c0_27 = arith.constant 0 : index
    %79 = vector.load %arg4[%c12, %c0_27] : memref<32x128xf32, #tpu.memory_space<vmem>>, vector<4x128xf32>
    %cst_28 = arith.constant dense<0.000000e+00> : vector<4x128xf32>
    %80 = tpu.matmul %74, %7, %cst_28 {dimension_numbers = #tpu.dot_dimension_numbers<[1], [0], [0], [1], [0, 0, 1, 1], [], []>} : vector<4x32xf32>, vector<32x128xf32>, vector<4x128xf32> -> vector<4x128xf32>
    %81 = arith.addf %79, %80 : vector<4x128xf32>
    %82 = vector.extract_strided_slice %81 {offsets = [0, 0], sizes = [4, 96], strides = [1, 1]} : vector<4x128xf32> to vector<4x96xf32>
    %83 = arith.negf %82 : vector<4x96xf32>
    %84 = math.exp %83 : vector<4x96xf32>
    %cst_29 = arith.constant 1.000000e+00 : f32
    %85 = vector.broadcast %cst_29 : f32 to vector<4x96xf32>
    %86 = arith.addf %85, %84 : vector<4x96xf32>
    %87 = arith.divf %85, %86 : vector<4x96xf32>
    %88 = vector.extract_strided_slice %81 {offsets = [0, 96], sizes = [4, 32], strides = [1, 1]} : vector<4x128xf32> to vector<4x32xf32>
    %89 = math.tanh %88 : vector<4x32xf32>
    %90 = vector.extract_strided_slice %87 {offsets = [0, 32], sizes = [4, 32], strides = [1, 1]} : vector<4x96xf32> to vector<4x32xf32>
    %91 = arith.mulf %90, %71 : vector<4x32xf32>
    %92 = vector.extract_strided_slice %87 {offsets = [0, 0], sizes = [4, 32], strides = [1, 1]} : vector<4x96xf32> to vector<4x32xf32>
    %93 = arith.mulf %92, %89 : vector<4x32xf32>
    %94 = arith.addf %91, %93 : vector<4x32xf32>
    %95 = vector.extract_strided_slice %87 {offsets = [0, 64], sizes = [4, 32], strides = [1, 1]} : vector<4x96xf32> to vector<4x32xf32>
    %96 = math.tanh %94 : vector<4x32xf32>
    %97 = arith.mulf %95, %96 : vector<4x32xf32>
    %98 = vector.extract_strided_slice %97 {offsets = [0, 0], sizes = [4, 16], strides = [1, 1]} : vector<4x32xf32> to vector<4x16xf32>
    %c12_30 = arith.constant 12 : index
    %c0_31 = arith.constant 0 : index
    %99 = vector.load %arg5[%c12_30, %c0_31] : memref<32x32xf32, #tpu.memory_space<vmem>>, vector<4x16xf32>
    tpu.vector_store %arg5[%c12_30, %c0_31], %98 {strides = array<i32>} : memref<32x32xf32, #tpu.memory_space<vmem>>, vector<4x16xf32>,
    %100 = vector.extract_strided_slice %97 {offsets = [0, 16], sizes = [4, 16], strides = [1, 1]} : vector<4x32xf32> to vector<4x16xf32>
    %c16_32 = arith.constant 16 : index
    %c16_33 = arith.constant 16 : index
    %101 = vector.load %arg5[%c16_32, %c16_33] : memref<32x32xf32, #tpu.memory_space<vmem>>, vector<4x16xf32>
    tpu.vector_store %arg5[%c16_32, %c16_33], %100 {strides = array<i32>} : memref<32x32xf32, #tpu.memory_space<vmem>>, vector<4x16xf32>,
    %c16_34 = arith.constant 16 : index
    %c0_35 = arith.constant 0 : index
    %102 = vector.load %arg4[%c16_34, %c0_35] : memref<32x128xf32, #tpu.memory_space<vmem>>, vector<4x128xf32>
    %cst_36 = arith.constant dense<0.000000e+00> : vector<4x128xf32>
    %103 = tpu.matmul %97, %7, %cst_36 {dimension_numbers = #tpu.dot_dimension_numbers<[1], [0], [0], [1], [0, 0, 1, 1], [], []>} : vector<4x32xf32>, vector<32x128xf32>, vector<4x128xf32> -> vector<4x128xf32>
    %104 = arith.addf %102, %103 : vector<4x128xf32>
    %105 = vector.extract_strided_slice %104 {offsets = [0, 0], sizes = [4, 96], strides = [1, 1]} : vector<4x128xf32> to vector<4x96xf32>
    %106 = arith.negf %105 : vector<4x96xf32>
    %107 = math.exp %106 : vector<4x96xf32>
    %cst_37 = arith.constant 1.000000e+00 : f32
    %108 = vector.broadcast %cst_37 : f32 to vector<4x96xf32>
    %109 = arith.addf %108, %107 : vector<4x96xf32>
    %110 = arith.divf %108, %109 : vector<4x96xf32>
    %111 = vector.extract_strided_slice %104 {offsets = [0, 96], sizes = [4, 32], strides = [1, 1]} : vector<4x128xf32> to vector<4x32xf32>
    %112 = math.tanh %111 : vector<4x32xf32>
    %113 = vector.extract_strided_slice %110 {offsets = [0, 32], sizes = [4, 32], strides = [1, 1]} : vector<4x96xf32> to vector<4x32xf32>
    %114 = arith.mulf %113, %94 : vector<4x32xf32>
    %115 = vector.extract_strided_slice %110 {offsets = [0, 0], sizes = [4, 32], strides = [1, 1]} : vector<4x96xf32> to vector<4x32xf32>
    %116 = arith.mulf %115, %112 : vector<4x32xf32>
    %117 = arith.addf %114, %116 : vector<4x32xf32>
    %118 = vector.extract_strided_slice %110 {offsets = [0, 64], sizes = [4, 32], strides = [1, 1]} : vector<4x96xf32> to vector<4x32xf32>
    %119 = math.tanh %117 : vector<4x32xf32>
    %120 = arith.mulf %118, %119 : vector<4x32xf32>
    %121 = vector.extract_strided_slice %120 {offsets = [0, 0], sizes = [4, 16], strides = [1, 1]} : vector<4x32xf32> to vector<4x16xf32>
    %c16_38 = arith.constant 16 : index
    %c0_39 = arith.constant 0 : index
    %122 = vector.load %arg5[%c16_38, %c0_39] : memref<32x32xf32, #tpu.memory_space<vmem>>, vector<4x16xf32>
    tpu.vector_store %arg5[%c16_38, %c0_39], %121 {strides = array<i32>} : memref<32x32xf32, #tpu.memory_space<vmem>>, vector<4x16xf32>,
    %123 = vector.extract_strided_slice %120 {offsets = [0, 16], sizes = [4, 16], strides = [1, 1]} : vector<4x32xf32> to vector<4x16xf32>
    %c12_40 = arith.constant 12 : index
    %c16_41 = arith.constant 16 : index
    %124 = vector.load %arg5[%c12_40, %c16_41] : memref<32x32xf32, #tpu.memory_space<vmem>>, vector<4x16xf32>
    tpu.vector_store %arg5[%c12_40, %c16_41], %123 {strides = array<i32>} : memref<32x32xf32, #tpu.memory_space<vmem>>, vector<4x16xf32>,
    %c20_42 = arith.constant 20 : index
    %c0_43 = arith.constant 0 : index
    %125 = vector.load %arg4[%c20_42, %c0_43] : memref<32x128xf32, #tpu.memory_space<vmem>>, vector<4x128xf32>
    %cst_44 = arith.constant dense<0.000000e+00> : vector<4x128xf32>
    %126 = tpu.matmul %120, %7, %cst_44 {dimension_numbers = #tpu.dot_dimension_numbers<[1], [0], [0], [1], [0, 0, 1, 1], [], []>} : vector<4x32xf32>, vector<32x128xf32>, vector<4x128xf32> -> vector<4x128xf32>
    %127 = arith.addf %125, %126 : vector<4x128xf32>
    %128 = vector.extract_strided_slice %127 {offsets = [0, 0], sizes = [4, 96], strides = [1, 1]} : vector<4x128xf32> to vector<4x96xf32>
    %129 = arith.negf %128 : vector<4x96xf32>
    %130 = math.exp %129 : vector<4x96xf32>
    %cst_45 = arith.constant 1.000000e+00 : f32
    %131 = vector.broadcast %cst_45 : f32 to vector<4x96xf32>
    %132 = arith.addf %131, %130 : vector<4x96xf32>
    %133 = arith.divf %131, %132 : vector<4x96xf32>
    %134 = vector.extract_strided_slice %127 {offsets = [0, 96], sizes = [4, 32], strides = [1, 1]} : vector<4x128xf32> to vector<4x32xf32>
    %135 = math.tanh %134 : vector<4x32xf32>
    %136 = vector.extract_strided_slice %133 {offsets = [0, 32], sizes = [4, 32], strides = [1, 1]} : vector<4x96xf32> to vector<4x32xf32>
    %137 = arith.mulf %136, %117 : vector<4x32xf32>
    %138 = vector.extract_strided_slice %133 {offsets = [0, 0], sizes = [4, 32], strides = [1, 1]} : vector<4x96xf32> to vector<4x32xf32>
    %139 = arith.mulf %138, %135 : vector<4x32xf32>
    %140 = arith.addf %137, %139 : vector<4x32xf32>
    %141 = vector.extract_strided_slice %133 {offsets = [0, 64], sizes = [4, 32], strides = [1, 1]} : vector<4x96xf32> to vector<4x32xf32>
    %142 = math.tanh %140 : vector<4x32xf32>
    %143 = arith.mulf %141, %142 : vector<4x32xf32>
    %144 = vector.extract_strided_slice %143 {offsets = [0, 0], sizes = [4, 16], strides = [1, 1]} : vector<4x32xf32> to vector<4x16xf32>
    %c20_46 = arith.constant 20 : index
    %c0_47 = arith.constant 0 : index
    %145 = vector.load %arg5[%c20_46, %c0_47] : memref<32x32xf32, #tpu.memory_space<vmem>>, vector<4x16xf32>
    tpu.vector_store %arg5[%c20_46, %c0_47], %144 {strides = array<i32>} : memref<32x32xf32, #tpu.memory_space<vmem>>, vector<4x16xf32>,
    %146 = vector.extract_strided_slice %143 {offsets = [0, 16], sizes = [4, 16], strides = [1, 1]} : vector<4x32xf32> to vector<4x16xf32>
    %c8_48 = arith.constant 8 : index
    %c16_49 = arith.constant 16 : index
    %147 = vector.load %arg5[%c8_48, %c16_49] : memref<32x32xf32, #tpu.memory_space<vmem>>, vector<4x16xf32>
    tpu.vector_store %arg5[%c8_48, %c16_49], %146 {strides = array<i32>} : memref<32x32xf32, #tpu.memory_space<vmem>>, vector<4x16xf32>,
    %c24_50 = arith.constant 24 : index
    %c0_51 = arith.constant 0 : index
    %148 = vector.load %arg4[%c24_50, %c0_51] : memref<32x128xf32, #tpu.memory_space<vmem>>, vector<4x128xf32>
    %cst_52 = arith.constant dense<0.000000e+00> : vector<4x128xf32>
    %149 = tpu.matmul %143, %7, %cst_52 {dimension_numbers = #tpu.dot_dimension_numbers<[1], [0], [0], [1], [0, 0, 1, 1], [], []>} : vector<4x32xf32>, vector<32x128xf32>, vector<4x128xf32> -> vector<4x128xf32>
    %150 = arith.addf %148, %149 : vector<4x128xf32>
    %151 = vector.extract_strided_slice %150 {offsets = [0, 0], sizes = [4, 96], strides = [1, 1]} : vector<4x128xf32> to vector<4x96xf32>
    %152 = arith.negf %151 : vector<4x96xf32>
    %153 = math.exp %152 : vector<4x96xf32>
    %cst_53 = arith.constant 1.000000e+00 : f32
    %154 = vector.broadcast %cst_53 : f32 to vector<4x96xf32>
    %155 = arith.addf %154, %153 : vector<4x96xf32>
    %156 = arith.divf %154, %155 : vector<4x96xf32>
    %157 = vector.extract_strided_slice %150 {offsets = [0, 96], sizes = [4, 32], strides = [1, 1]} : vector<4x128xf32> to vector<4x32xf32>
    %158 = math.tanh %157 : vector<4x32xf32>
    %159 = vector.extract_strided_slice %156 {offsets = [0, 32], sizes = [4, 32], strides = [1, 1]} : vector<4x96xf32> to vector<4x32xf32>
    %160 = arith.mulf %159, %140 : vector<4x32xf32>
    %161 = vector.extract_strided_slice %156 {offsets = [0, 0], sizes = [4, 32], strides = [1, 1]} : vector<4x96xf32> to vector<4x32xf32>
    %162 = arith.mulf %161, %158 : vector<4x32xf32>
    %163 = arith.addf %160, %162 : vector<4x32xf32>
    %164 = vector.extract_strided_slice %156 {offsets = [0, 64], sizes = [4, 32], strides = [1, 1]} : vector<4x96xf32> to vector<4x32xf32>
    %165 = math.tanh %163 : vector<4x32xf32>
    %166 = arith.mulf %164, %165 : vector<4x32xf32>
    %167 = vector.extract_strided_slice %166 {offsets = [0, 0], sizes = [4, 16], strides = [1, 1]} : vector<4x32xf32> to vector<4x16xf32>
    %c24_54 = arith.constant 24 : index
    %c0_55 = arith.constant 0 : index
    %168 = vector.load %arg5[%c24_54, %c0_55] : memref<32x32xf32, #tpu.memory_space<vmem>>, vector<4x16xf32>
    tpu.vector_store %arg5[%c24_54, %c0_55], %167 {strides = array<i32>} : memref<32x32xf32, #tpu.memory_space<vmem>>, vector<4x16xf32>,
    %169 = vector.extract_strided_slice %166 {offsets = [0, 16], sizes = [4, 16], strides = [1, 1]} : vector<4x32xf32> to vector<4x16xf32>
    %c4_56 = arith.constant 4 : index
    %c16_57 = arith.constant 16 : index
    %170 = vector.load %arg5[%c4_56, %c16_57] : memref<32x32xf32, #tpu.memory_space<vmem>>, vector<4x16xf32>
    tpu.vector_store %arg5[%c4_56, %c16_57], %169 {strides = array<i32>} : memref<32x32xf32, #tpu.memory_space<vmem>>, vector<4x16xf32>,
    %c28_58 = arith.constant 28 : index
    %c0_59 = arith.constant 0 : index
    %171 = vector.load %arg4[%c28_58, %c0_59] : memref<32x128xf32, #tpu.memory_space<vmem>>, vector<4x128xf32>
    %cst_60 = arith.constant dense<0.000000e+00> : vector<4x128xf32>
    %172 = tpu.matmul %166, %7, %cst_60 {dimension_numbers = #tpu.dot_dimension_numbers<[1], [0], [0], [1], [0, 0, 1, 1], [], []>} : vector<4x32xf32>, vector<32x128xf32>, vector<4x128xf32> -> vector<4x128xf32>
    %173 = arith.addf %171, %172 : vector<4x128xf32>
    %174 = vector.extract_strided_slice %173 {offsets = [0, 0], sizes = [4, 96], strides = [1, 1]} : vector<4x128xf32> to vector<4x96xf32>
    %175 = arith.negf %174 : vector<4x96xf32>
    %176 = math.exp %175 : vector<4x96xf32>
    %cst_61 = arith.constant 1.000000e+00 : f32
    %177 = vector.broadcast %cst_61 : f32 to vector<4x96xf32>
    %178 = arith.addf %177, %176 : vector<4x96xf32>
    %179 = arith.divf %177, %178 : vector<4x96xf32>
    %180 = vector.extract_strided_slice %173 {offsets = [0, 96], sizes = [4, 32], strides = [1, 1]} : vector<4x128xf32> to vector<4x32xf32>
    %181 = math.tanh %180 : vector<4x32xf32>
    %182 = vector.extract_strided_slice %179 {offsets = [0, 32], sizes = [4, 32], strides = [1, 1]} : vector<4x96xf32> to vector<4x32xf32>
    %183 = arith.mulf %182, %163 : vector<4x32xf32>
    %184 = vector.extract_strided_slice %179 {offsets = [0, 0], sizes = [4, 32], strides = [1, 1]} : vector<4x96xf32> to vector<4x32xf32>
    %185 = arith.mulf %184, %181 : vector<4x32xf32>
    %186 = arith.addf %183, %185 : vector<4x32xf32>
    %187 = vector.extract_strided_slice %179 {offsets = [0, 64], sizes = [4, 32], strides = [1, 1]} : vector<4x96xf32> to vector<4x32xf32>
    %188 = math.tanh %186 : vector<4x32xf32>
    %189 = arith.mulf %187, %188 : vector<4x32xf32>
    %190 = vector.extract_strided_slice %189 {offsets = [0, 0], sizes = [4, 16], strides = [1, 1]} : vector<4x32xf32> to vector<4x16xf32>
    %c28_62 = arith.constant 28 : index
    %c0_63 = arith.constant 0 : index
    %191 = vector.load %arg5[%c28_62, %c0_63] : memref<32x32xf32, #tpu.memory_space<vmem>>, vector<4x16xf32>
    tpu.vector_store %arg5[%c28_62, %c0_63], %190 {strides = array<i32>} : memref<32x32xf32, #tpu.memory_space<vmem>>, vector<4x16xf32>,
    %192 = vector.extract_strided_slice %189 {offsets = [0, 16], sizes = [4, 16], strides = [1, 1]} : vector<4x32xf32> to vector<4x16xf32>
    %c0_64 = arith.constant 0 : index
    %c16_65 = arith.constant 16 : index
    %193 = vector.load %arg5[%c0_64, %c16_65] : memref<32x32xf32, #tpu.memory_space<vmem>>, vector<4x16xf32>
    tpu.vector_store %arg5[%c0_64, %c16_65], %192 {strides = array<i32>} : memref<32x32xf32, #tpu.memory_space<vmem>>, vector<4x16xf32>,
    %c104 = arith.constant 104 : index
    %c0_66 = arith.constant 0 : index
    %194 = vector.load %arg2[%c104, %c0_66] : memref<144x128xf32, #tpu.memory_space<vmem>>, vector<32x16xf32>
    %c136 = arith.constant 136 : index
    %c0_67 = arith.constant 0 : index
    %195 = vector.load %arg2[%c136, %c0_67] : memref<144x128xf32, #tpu.memory_space<vmem>>, vector<1x16xf32>
    %c0_68 = arith.constant 0 : index
    %c0_69 = arith.constant 0 : index
    %196 = vector.load %arg5[%c0_68, %c0_69] : memref<32x32xf32, #tpu.memory_space<vmem>>, vector<32x32xf32>
    %cst_70 = arith.constant dense<0.000000e+00> : vector<32x16xf32>
    %197 = tpu.matmul %196, %194, %cst_70 {dimension_numbers = #tpu.dot_dimension_numbers<[1], [0], [0], [1], [0, 0, 1, 1], [], []>} : vector<32x32xf32>, vector<32x16xf32>, vector<32x16xf32> -> vector<32x16xf32>
    %198 = math.tanh %197 : vector<32x16xf32>
    %199 = vector.broadcast %195 : vector<1x16xf32> to vector<32x16xf32>
    %200 = arith.mulf %198, %199 : vector<32x16xf32>
    %cst_71 = arith.constant dense<0.000000e+00> : vector<32xf32>
    %201 = vector.multi_reduction <add>, %200, %cst_71 [1] : vector<32x16xf32> to vector<32xf32>
    %202 = vector.shape_cast %201 : vector<32xf32> to vector<32x1xf32>
    %203 = vector.extract_strided_slice %202 {offsets = [0, 0], sizes = [4, 1], strides = [1, 1]} : vector<32x1xf32> to vector<4x1xf32>
    %204 = vector.extract_strided_slice %202 {offsets = [4, 0], sizes = [4, 1], strides = [1, 1]} : vector<32x1xf32> to vector<4x1xf32>
    %205 = vector.extract_strided_slice %202 {offsets = [8, 0], sizes = [4, 1], strides = [1, 1]} : vector<32x1xf32> to vector<4x1xf32>
    %206 = vector.extract_strided_slice %202 {offsets = [12, 0], sizes = [4, 1], strides = [1, 1]} : vector<32x1xf32> to vector<4x1xf32>
    %207 = vector.extract_strided_slice %202 {offsets = [16, 0], sizes = [4, 1], strides = [1, 1]} : vector<32x1xf32> to vector<4x1xf32>
    %208 = vector.extract_strided_slice %202 {offsets = [20, 0], sizes = [4, 1], strides = [1, 1]} : vector<32x1xf32> to vector<4x1xf32>
    %209 = vector.extract_strided_slice %202 {offsets = [24, 0], sizes = [4, 1], strides = [1, 1]} : vector<32x1xf32> to vector<4x1xf32>
    %210 = vector.extract_strided_slice %202 {offsets = [28, 0], sizes = [4, 1], strides = [1, 1]} : vector<32x1xf32> to vector<4x1xf32>
    %211 = tpu.concatenate %203, %204, %205, %206, %207, %208, %209, %210 in 1 : vector<4x1xf32>, vector<4x1xf32>, vector<4x1xf32>, vector<4x1xf32>, vector<4x1xf32>, vector<4x1xf32>, vector<4x1xf32>, vector<4x1xf32> -> vector<4x8xf32>
    %cst_72 = arith.constant dense<0xFF800000> : vector<4xf32>
    %212 = vector.multi_reduction <maximumf>, %211, %cst_72 [1] : vector<4x8xf32> to vector<4xf32>
    %213 = vector.shape_cast %212 : vector<4xf32> to vector<4x1xf32>
    %214 = vector.broadcast %213 : vector<4x1xf32> to vector<4x8xf32>
    %215 = arith.subf %211, %214 : vector<4x8xf32>
    %216 = math.exp %215 : vector<4x8xf32>
    %cst_73 = arith.constant dense<0.000000e+00> : vector<4xf32>
    %217 = vector.multi_reduction <add>, %216, %cst_73 [1] : vector<4x8xf32> to vector<4xf32>
    %218 = vector.shape_cast %217 : vector<4xf32> to vector<4x1xf32>
    %219 = tpu.reciprocal %218 {approx = true} : vector<4x1xf32> -> vector<4x1xf32>
    %220 = vector.broadcast %219 : vector<4x1xf32> to vector<4x8xf32>
    %221 = arith.mulf %216, %220 : vector<4x8xf32>
    %222 = vector.extract_strided_slice %196 {offsets = [0, 0], sizes = [4, 32], strides = [1, 1]} : vector<32x32xf32> to vector<4x32xf32>
    %223 = vector.extract_strided_slice %221 {offsets = [0, 0], sizes = [4, 1], strides = [1, 1]} : vector<4x8xf32> to vector<4x1xf32>
    %224 = vector.broadcast %223 : vector<4x1xf32> to vector<4x32xf32>
    %225 = arith.mulf %222, %224 : vector<4x32xf32>
    %226 = vector.extract_strided_slice %196 {offsets = [4, 0], sizes = [4, 32], strides = [1, 1]} : vector<32x32xf32> to vector<4x32xf32>
    %227 = vector.extract_strided_slice %221 {offsets = [0, 1], sizes = [4, 1], strides = [1, 1]} : vector<4x8xf32> to vector<4x1xf32>
    %228 = vector.broadcast %227 : vector<4x1xf32> to vector<4x32xf32>
    %229 = arith.mulf %226, %228 : vector<4x32xf32>
    %230 = arith.addf %225, %229 : vector<4x32xf32>
    %231 = vector.extract_strided_slice %196 {offsets = [8, 0], sizes = [4, 32], strides = [1, 1]} : vector<32x32xf32> to vector<4x32xf32>
    %232 = vector.extract_strided_slice %221 {offsets = [0, 2], sizes = [4, 1], strides = [1, 1]} : vector<4x8xf32> to vector<4x1xf32>
    %233 = vector.broadcast %232 : vector<4x1xf32> to vector<4x32xf32>
    %234 = arith.mulf %231, %233 : vector<4x32xf32>
    %235 = arith.addf %230, %234 : vector<4x32xf32>
    %236 = vector.extract_strided_slice %196 {offsets = [12, 0], sizes = [4, 32], strides = [1, 1]} : vector<32x32xf32> to vector<4x32xf32>
    %237 = vector.extract_strided_slice %221 {offsets = [0, 3], sizes = [4, 1], strides = [1, 1]} : vector<4x8xf32> to vector<4x1xf32>
    %238 = vector.broadcast %237 : vector<4x1xf32> to vector<4x32xf32>
    %239 = arith.mulf %236, %238 : vector<4x32xf32>
    %240 = arith.addf %235, %239 : vector<4x32xf32>
    %241 = vector.extract_strided_slice %196 {offsets = [16, 0], sizes = [4, 32], strides = [1, 1]} : vector<32x32xf32> to vector<4x32xf32>
    %242 = vector.extract_strided_slice %221 {offsets = [0, 4], sizes = [4, 1], strides = [1, 1]} : vector<4x8xf32> to vector<4x1xf32>
    %243 = vector.broadcast %242 : vector<4x1xf32> to vector<4x32xf32>
    %244 = arith.mulf %241, %243 : vector<4x32xf32>
    %245 = arith.addf %240, %244 : vector<4x32xf32>
    %246 = vector.extract_strided_slice %196 {offsets = [20, 0], sizes = [4, 32], strides = [1, 1]} : vector<32x32xf32> to vector<4x32xf32>
    %247 = vector.extract_strided_slice %221 {offsets = [0, 5], sizes = [4, 1], strides = [1, 1]} : vector<4x8xf32> to vector<4x1xf32>
    %248 = vector.broadcast %247 : vector<4x1xf32> to vector<4x32xf32>
    %249 = arith.mulf %246, %248 : vector<4x32xf32>
    %250 = arith.addf %245, %249 : vector<4x32xf32>
    %251 = vector.extract_strided_slice %196 {offsets = [24, 0], sizes = [4, 32], strides = [1, 1]} : vector<32x32xf32> to vector<4x32xf32>
    %252 = vector.extract_strided_slice %221 {offsets = [0, 6], sizes = [4, 1], strides = [1, 1]} : vector<4x8xf32> to vector<4x1xf32>
    %253 = vector.broadcast %252 : vector<4x1xf32> to vector<4x32xf32>
    %254 = arith.mulf %251, %253 : vector<4x32xf32>
    %255 = arith.addf %250, %254 : vector<4x32xf32>
    %256 = vector.extract_strided_slice %196 {offsets = [28, 0], sizes = [4, 32], strides = [1, 1]} : vector<32x32xf32> to vector<4x32xf32>
    %257 = vector.extract_strided_slice %221 {offsets = [0, 7], sizes = [4, 1], strides = [1, 1]} : vector<4x8xf32> to vector<4x1xf32>
    %258 = vector.broadcast %257 : vector<4x1xf32> to vector<4x32xf32>
    %259 = arith.mulf %256, %258 : vector<4x32xf32>
    %260 = arith.addf %255, %259 : vector<4x32xf32>
    %c0_74 = arith.constant 0 : index
    %c0_75 = arith.constant 0 : index
    %261 = vector.load %arg0[%c0_74, %c0_75] : memref<8x32xf32, #tpu.memory_space<vmem>>, vector<8x32xf32>
    %cst_76 = arith.constant dense<0.000000e+00> : vector<8x4xf32>
    %262 = tpu.matmul %261, %260, %cst_76 {dimension_numbers = #tpu.dot_dimension_numbers<[1], [1], [0], [0], [0, 0, 1, 0], [], []>} : vector<8x32xf32>, vector<4x32xf32>, vector<8x4xf32> -> vector<8x4xf32>
    %263 = math.tanh %262 : vector<8x4xf32>
    %cst_77 = arith.constant dense<0xFF800000> : vector<8xf32>
    %264 = vector.multi_reduction <maximumf>, %263, %cst_77 [1] : vector<8x4xf32> to vector<8xf32>
    %265 = vector.shape_cast %264 : vector<8xf32> to vector<8x1xf32>
    %266 = vector.broadcast %265 : vector<8x1xf32> to vector<8x4xf32>
    %267 = arith.subf %263, %266 : vector<8x4xf32>
    %268 = math.exp %267 : vector<8x4xf32>
    %cst_78 = arith.constant dense<0.000000e+00> : vector<8xf32>
    %269 = vector.multi_reduction <add>, %268, %cst_78 [1] : vector<8x4xf32> to vector<8xf32>
    %270 = vector.shape_cast %269 : vector<8xf32> to vector<8x1xf32>
    %271 = tpu.reciprocal %270 {approx = true} : vector<8x1xf32> -> vector<8x1xf32>
    %272 = vector.broadcast %271 : vector<8x1xf32> to vector<8x4xf32>
    %273 = arith.mulf %268, %272 : vector<8x4xf32>
    %274 = vector.extract_strided_slice %273 {offsets = [0, 0], sizes = [1, 4], strides = [1, 1]} : vector<8x4xf32> to vector<1x4xf32>
    %275 = vector.extract_strided_slice %273 {offsets = [1, 0], sizes = [1, 4], strides = [1, 1]} : vector<8x4xf32> to vector<1x4xf32>
    %276 = vector.extract_strided_slice %273 {offsets = [2, 0], sizes = [1, 4], strides = [1, 1]} : vector<8x4xf32> to vector<1x4xf32>
    %277 = vector.extract_strided_slice %273 {offsets = [3, 0], sizes = [1, 4], strides = [1, 1]} : vector<8x4xf32> to vector<1x4xf32>
    %278 = vector.extract_strided_slice %273 {offsets = [4, 0], sizes = [1, 4], strides = [1, 1]} : vector<8x4xf32> to vector<1x4xf32>
    %279 = vector.extract_strided_slice %273 {offsets = [5, 0], sizes = [1, 4], strides = [1, 1]} : vector<8x4xf32> to vector<1x4xf32>
    %280 = vector.extract_strided_slice %273 {offsets = [6, 0], sizes = [1, 4], strides = [1, 1]} : vector<8x4xf32> to vector<1x4xf32>
    %281 = vector.extract_strided_slice %273 {offsets = [7, 0], sizes = [1, 4], strides = [1, 1]} : vector<8x4xf32> to vector<1x4xf32>
    %282 = tpu.concatenate %274, %275, %276, %277, %278, %279, %280, %281 in 1 : vector<1x4xf32>, vector<1x4xf32>, vector<1x4xf32>, vector<1x4xf32>, vector<1x4xf32>, vector<1x4xf32>, vector<1x4xf32>, vector<1x4xf32> -> vector<1x32xf32>
    %283 = vector.extract_strided_slice %282 {offsets = [0, 0], sizes = [1, 8], strides = [1, 1]} : vector<1x32xf32> to vector<1x8xf32>
    %284 = vector.extract_strided_slice %282 {offsets = [0, 8], sizes = [1, 8], strides = [1, 1]} : vector<1x32xf32> to vector<1x8xf32>
    %285 = vector.extract_strided_slice %282 {offsets = [0, 16], sizes = [1, 8], strides = [1, 1]} : vector<1x32xf32> to vector<1x8xf32>
    %286 = vector.extract_strided_slice %282 {offsets = [0, 24], sizes = [1, 8], strides = [1, 1]} : vector<1x32xf32> to vector<1x8xf32>
    %287 = tpu.concatenate %283, %284, %285, %286 in 0 : vector<1x8xf32>, vector<1x8xf32>, vector<1x8xf32>, vector<1x8xf32> -> vector<4x8xf32>
    %cst_79 = arith.constant dense<0.000000e+00> : vector<8x32xf32>
    %288 = tpu.matmul %287, %260, %cst_79 {dimension_numbers = #tpu.dot_dimension_numbers<[0], [0], [1], [1], [0, 1, 1, 1], [], []>} : vector<4x8xf32>, vector<4x32xf32>, vector<8x32xf32> -> vector<8x32xf32>
    %c0_80 = arith.constant 0 : index
    %c0_81 = arith.constant 0 : index
    %289 = vector.load %arg3[%c0_80, %c0_81] : memref<8x32xf32, #tpu.memory_space<vmem>>, vector<8x32xf32>
    tpu.vector_store %arg3[%c0_80, %c0_81], %288 {strides = array<i32>} : memref<8x32xf32, #tpu.memory_space<vmem>>, vector<8x32xf32>,
    return
  }
}

</mosaic_0001>

<bundles_post_ra>
// kernel: _label_layer_forward.1
= control target key start
LH: loop header
LB: loop body
LE: loop exit
PB: predicated region body
PF: predicated region fallthrough
CT: control target
= control target key end

     0   :  { %vm32_vm0 = vcmask 523264   ;;  %v1917_v5 = vmov 0.0|0.0   ;;  %vm1918_vm1 = vmmov 0   ;;  %v1919_v10 = vmov 0.0   ;;  %s2205_s0 = inlined_call_operand.vmem [shape: f32[8,32], index: 0, kind: input, shape index: {}]   ;;  %s2206_s1 = inlined_call_operand.vmem [shape: f32[32,64], index: 1, kind: input, shape index: {}]   ;;  %s2207_s2 = inlined_call_operand.vmem [shape: f32[144,128], index: 2, kind: input, shape index: {}]   ;;  %s2208_s3 = inlined_call_operand.hbm [shape: f32[8,32], index: 3, kind: output, shape index: {}]  }
   0x1   :  { %v15_v0 = vld [vmem:[%s2207_s2] sm:$0xff]  ;;  %v16_v1 = vld [vmem:[%s2207_s2 + $0x8] sm:$0xff]  ;;  %v17_v2 = vld [vmem:[%s2207_s2 + $0x10] sm:$0xff]  ;;  %1722 = vmatprep.subr.bf16.mxu1 %v1917_v5  ;;  %1602 = vmatprep.mubr.msk.f32.mxu1 %vm1918_vm1, %v1919_v10 }
   0x2   :  { %v1706_v3 = vpack.c.bf16 %v16_v1, %v15_v0  ;;  %v18_v4 = vld [vmem:[%s2207_s2 + $0x18] sm:$0xff]  ;;  %v19_v7 = vld [vmem:[%s2207_s2 + $0x20] sm:$0xff]  ;;  %v20_v8 = vld [vmem:[%s2207_s2 + $0x28] sm:$0xff] }
   0x3   :  { %v1710_v6 = vpack.c.bf16 %v18_v4, %v17_v2  ;;  %v24_v9 = vld [vmem:[%s2206_s1] sm:$0xff]  ;;  %v135_v12 = vld [vmem:[%s2207_s2 + $0x48] sm:$0xff]  ;;  %v136_v14 = vld [vmem:[%s2207_s2 + $0x50] sm:$0xff] }
   0x4   :  { %1707 = vmatprep.subr.bf16.mxu0 %v1706_v3  ;;  %1588 = vmatprep.mubr.msk.f32.mxu0 %vm32_vm0, %v24_v9  ;;  %v134_v11 = vld [vmem:[%s2207_s2 + $0x40] sm:$0xff]  ;;  %v137_v15 = vld [vmem:[%s2207_s2 + $0x58] sm:$0xff] }
   0x5   :  { %1709 = vmatpush3.bf16.msra.mxu0 %v1706_v3  ;;  %v1992_v13 = vpack.c.bf16 %v135_v12, %v134_v11 }
   0x6   :  { %8 = vsyncpa [#allocation5], 0  ;;  %1711 = vmatprep.subr.bf16.mxu0 %v1710_v6  ;;  %v1714_v16 = vpack.c.bf16 %v20_v8, %v19_v7  ;;  %v21_v17 = vld [vmem:[%s2207_s2 + $0x30] sm:$0xff]  ;;  %v22_v18 = vld [vmem:[%s2207_s2 + $0x38] sm:$0xff]  ;;  %v2007_v19 = vpack.c.bf16 %v137_v15, %v136_v14  ;;  %s1920_s15 = smov 32   ;;  %s1921_s16 = smov 64  }
   0x7   :  { %1724 = vmatpush3.bf16.msra.mxu1 %v1992_v13  ;;  %v1718_v20 = vpack.c.bf16 %v22_v18, %v21_v17  ;;  %v25_v21 = vld [vmem:[%s2206_s1 + $0x8] sm:$0xff]  ;;  %v2031_v24 = vld [vmem:[%s2207_s2 + $0x60] ss:$0 sm:$0xff]  ;;  %vm242_vm2 = vcmask 125952   ;;  %vm244_vm3 = vcmask 257152   ;;  %vm139_vm4 = vcmask 261120  }
   0x8   :  { %1725 = vmatprep.subr.bf16.mxu1 %v1917_v5  ;;  %v26_v59 = vld [vmem:[%s2206_s1 + $0x10] sm:$0xff]  ;;  %v27_v60 = vld [vmem:[%s2206_s1 + $0x18] sm:$0xff]  ;;  %vm1092_vm5 = vcmask 130048   ;;  %vm1117_vm6 = vcmask 7168   ;;  %vm1119_vm7 = vcmask 15360   ;;  %vm1121_vm8 = vcmask 23552  }
   0x9   :  { %1713 = vmatpush3.bf16.msra.mxu0 %v1710_v6  ;;  %vm1123_vm9 = vcmask 31744   ;;  %vm1125_vm10 = vcmask 39936   ;;  %vm1127_vm11 = vcmask 48128   ;;  %vm1129_vm12 = vcmask 56320   ;;  %s1931_s4 = smov 4   ;;  %s1932_s5 = smov 20  }
   0xa   :  { %1715 = vmatprep.subr.bf16.mxu0 %v1714_v16  ;;  %vm1131_vm13 = vcmask 60416   ;;  %vm1391_vm14 = vcmask 1043456   ;;  %s1933_s6 = smov 12   ;;  %s1934_s7 = smov 28   ;;  %vm1326_vm15 = vcmask 64512  }
   0xb   :  { %1727 = vmatpush3.bf16.msra.mxu1 %v2007_v19  ;;  %s1935_s8 = smov 16   ;;  %s1936_s9 = smov 24  }
   0xc   :  { %1728 = vmatprep.subr.bf16.mxu1 %v1917_v5  ;;  %s1937_s10 = smov 112   ;;  %s1938_s11 = smov 120  }
   0xd   :  { %1717 = vmatpush3.bf16.msra.mxu0 %v1714_v16  ;;  %s1939_s12 = smov 104   ;;  %s1940_s13 = smov [#allocation4]  }
   0xe   :  { %1719 = vmatprep.subr.bf16.mxu0 %v1718_v20  ;;  %1603 = vmatmul.mubr.f32.vlgmr.msra.gmra.mrb[0].mxu1 %v1919_v10  ;;  %s1471_s14 = sshll.u32 %s1940_s13, 4  ;;  %s1472_s14 = int_to_ptr.vmem [resolvable:$true] %s1471_s14 }
   0xf   :  { %1730 = vmatpush3.bf16.msra.mxu1 %v1992_v13  ;;  %1613 = vmatprep.mubr.msk.f32.mxu1 %vm1918_vm1, %v1919_v10  ;;  %p1898_p1 = scmp.lt.s32.totalorder %s1472_s14, %s1472_s14 }
  0x10   :  { %1731 = vmatprep.subr.bf16.mxu1 %v1917_v5 }
  0x11   :  { %1721 = vmatpush3.bf16.msra.mxu0 %v1718_v20 }
  0x12   :  { %1734 = vmatprep.subr.bf16.mxu0 %v1917_v5 }
  0x13   :  { %1733 = vmatpush3.bf16.msra.mxu1 %v2007_v19 }
  0x14   :  { %1589 = vmatmul.mubr.msk.f32.vlgmr.msra.gmra.mrb[0].mxu0 %vm32_vm0, %v25_v21  ;;  %1740 = vmatprep.subr.bf16.mxu1 %v1917_v5 }
  0x15   :  { %1736 = vmatpush3.bf16.msra.mxu0 %v1992_v13  ;;  %1591 = vmatprep.mubr.msk.f32.mxu0 %vm32_vm0, %v26_v59 }
  0x16   :  { %1737 = vmatprep.subr.bf16.mxu0 %v1917_v5 }
  0x18   :  { %1592 = vmatmul.mubr.msk.f32.gmra.mrb[2].mxu0 %vm32_vm0, %v27_v60  ;;  %vm1328_vm0 = vcmask 97280  }
  0x19   :  { %1739 = vmatpush3.bf16.msra.mxu0 %v2007_v19  ;;  %1624 = vmatprep.mubr.msk.f32.mxu0 %vm1918_vm1, %v1919_v10 }
  0x1a   :  { %1746 = vmatprep.subr.bf16.mxu0 %v1917_v5 }
  0xe1   :  { %v209_v22 = vpop.f32.mrb[0].mxu1 }
  0xe2   :  { %v1604_v23 = vpop.f32.mrb[1].mxu1 }
  0xe7   :  { %v1590_v25 = vpop.f32.mrb[0].mxu0 }
  0xe8   :  { %v117_v26 = vadd.f32 %v1590_v25, %v2031_v24  ;;  %v111_v27 = vpop.f32.mrb[1].mxu0 }
  0xe9   :  { %v112_v28 = vadd.f32 %v2031_v24, %v111_v27 }
  0xea   :  { %131 = vst [vmem:[#allocation2 + $0x8] sm:$0xff] %v117_v26 }
  0xeb   :  { %130 = vst [vmem:[#allocation2] sm:$0xff] %v112_v28  ;;  %v1593_v0 = vpop.f32.mrb[2].mxu0 }
  0xec   :  { %v127_v1 = vadd.f32 %v1593_v0, %v2031_v24  ;;  %v121_v2 = vpop.f32.mrb[3].mxu0 }
  0xed   :  { %v122_v3 = vadd.f32 %v2031_v24, %v121_v2 }
  0xee   :  { %133 = vst [vmem:[#allocation2 + $0x18] sm:$0xff] %v127_v1 }
  0xef   :  { %132 = vst [vmem:[#allocation2 + $0x10] sm:$0xff] %v122_v3 }
  0xf1   :  { %v350_v6 = vld [vmem:[#allocation2 + $0x8] sm:$0xf]  ;;  %v454_v27 = vld [vmem:[#allocation2 + $0xc] sm:$0xf] }
  0xf2   :  { %v138_v29 = vld [vmem:[#allocation2] sm:$0xf]  ;;  %v246_v45 = vld [vmem:[#allocation2 + $0x4] sm:$0xf] }
  0xf3   :  { %v213_v30 = vadd.f32 %v209_v22, %v138_v29 }
  0xf5   :  { %1811 = vtanh.f32 %v213_v30  ;;  %v1484_v32 = vmul.f32 -1.442695, %v213_v30 }
  0xf7   :  { %1813 = vpow2.f32 %v1484_v32 }
  0xff   :  { %v1812_v31 = vpop.eup %1811 }
 0x100   :  { %223 = vrot.lane.b32.xlu0 %v1812_v31, %s1920_s15 }
 0x101   :  { %v1814_v33 = vpop.eup %1813 }
 0x102   :  { %v217_v34 = vadd.f32 1.0, %v1814_v33 }
 0x104   :  { %1815 = vrcp.f32 %v217_v34 }
 0x10e   :  { %v1816_v35 = vpop.eup %1815 }
 0x10f   :  { %v221_v38 = vmul.f32 0.0, %v1816_v35 }
 0x172   :  { %v224_v36 = vpop.permute.xlu0 %223 }
 0x173   :  { %v226_v37 = vmul.f32 %v1816_v35, %v224_v36 }
 0x175   :  { %228 = vrot.lane.b32.xlu0 %v226_v37, %s1920_s15 }
 0x1e7   :  { %v229_v39 = vpop.permute.xlu0 %228 }
 0x1e8   :  { %v231_v40 = vadd.f32 %v229_v39, %v221_v38 }
 0x1ea   :  { %1817 = vtanh.f32 %v231_v40 }
 0x1f4   :  { %v1818_v41 = vpop.eup %1817 }
 0x1f5   :  { %234 = vrot.lane.b32.xlu1 %v1818_v41, %s1920_s15 }
 0x267   :  { %v235_v42 = vpop.permute.xlu1 %234 }
 0x268   :  { %v237_v43 = vmul.f32 %v1816_v35, %v235_v42 }
 0x26a   :  { %239 = vrot.lane.b32.xlu1 %v237_v43, %s1921_s16 }
 0x2dc   :  { %v240_v44 = vpop.permute.xlu1 %239 }
 0x2dd   :  { %243 = vst.msk [vmem:[#allocation3] sm:$0xf] %vm242_vm2, %v240_v44  ;;  %1614 = vmatmul.mubr.msk.f32.vlgmr.msra.gmra.mrb[2].mxu1 %vm139_vm4, %v240_v44 }
 0x2de   :  { %245 = vst.msk [vmem:[#allocation3 + $0x1c] sm:$0xf] %vm244_vm3, %v240_v44  ;;  %1742 = vmatpush3.bf16.msra.mxu1 %v1992_v13  ;;  %1635 = vmatprep.mubr.msk.f32.mxu1 %vm1918_vm1, %v1919_v10 }
 0x2df   :  { %1743 = vmatprep.subr.bf16.mxu1 %v1917_v5 }
 0x2e2   :  { %1745 = vmatpush3.bf16.msra.mxu1 %v2007_v19 }
 0x2e3   :  { %1752 = vmatprep.subr.bf16.mxu1 %v1917_v5 }
 0x3b0   :  { %v315_v46 = vpop.f32.mrb[2].mxu1 }
 0x3b1   :  { %v319_v47 = vadd.f32 %v315_v46, %v246_v45  ;;  %v1615_v48 = vpop.f32.mrb[3].mxu1  ;;  %v558_v45 = vld [vmem:[#allocation2 + $0x10] sm:$0xf] }
 0x3b3   :  { %1819 = vtanh.f32 %v319_v47  ;;  %v1486_v50 = vmul.f32 -1.442695, %v319_v47 }
 0x3b5   :  { %1821 = vpow2.f32 %v1486_v50 }
 0x3bd   :  { %v1820_v49 = vpop.eup %1819 }
 0x3be   :  { %329 = vrot.lane.b32.xlu0 %v1820_v49, %s1920_s15 }
 0x3bf   :  { %v1822_v51 = vpop.eup %1821 }
 0x3c0   :  { %v323_v52 = vadd.f32 1.0, %v1822_v51 }
 0x3c2   :  { %1823 = vrcp.f32 %v323_v52 }
 0x3cc   :  { %v1824_v53 = vpop.eup %1823 }
 0x3cd   :  { %v327_v56 = vmul.f32 %v1824_v53, %v231_v40 }
 0x430   :  { %v330_v54 = vpop.permute.xlu0 %329 }
 0x431   :  { %v332_v55 = vmul.f32 %v1824_v53, %v330_v54 }
 0x433   :  { %334 = vrot.lane.b32.xlu1 %v332_v55, %s1920_s15 }
 0x4a5   :  { %v335_v57 = vpop.permute.xlu1 %334 }
 0x4a6   :  { %v337_v58 = vadd.f32 %v335_v57, %v327_v56 }
 0x4a8   :  { %1825 = vtanh.f32 %v337_v58 }
 0x4b2   :  { %v1826_v61 = vpop.eup %1825 }
 0x4b3   :  { %340 = vrot.lane.b32.xlu0 %v1826_v61, %s1920_s15 }
 0x525   :  { %v341_v62 = vpop.permute.xlu0 %340 }
 0x526   :  { %v343_v63 = vmul.f32 %v1824_v53, %v341_v62 }
 0x528   :  { %345 = vrot.lane.b32.xlu1 %v343_v63, %s1921_s16  ;;  %v662_v63 = vld [vmem:[#allocation2 + $0x14] sm:$0xf] }
 0x59a   :  { %v346_v4 = vpop.permute.xlu1 %345 }
 0x59b   :  { %348 = vst.msk [vmem:[#allocation3 + $0x4] sm:$0xf] %vm242_vm2, %v346_v4  ;;  %1625 = vmatmul.mubr.msk.f32.vlgmr.msra.gmra.mrb[4].mxu0 %vm139_vm4, %v346_v4 }
 0x59c   :  { %349 = vst.msk [vmem:[#allocation3 + $0x18] sm:$0xf] %vm244_vm3, %v346_v4  ;;  %1748 = vmatpush3.bf16.msra.mxu0 %v1992_v13  ;;  %1646 = vmatprep.mubr.msk.f32.mxu0 %vm1918_vm1, %v1919_v10 }
 0x59d   :  { %1749 = vmatprep.subr.bf16.mxu0 %v1917_v5 }
 0x5a0   :  { %1751 = vmatpush3.bf16.msra.mxu0 %v2007_v19 }
 0x5a1   :  { %1758 = vmatprep.subr.bf16.mxu0 %v1917_v5 }
 0x66e   :  { %v419_v7 = vpop.f32.mrb[4].mxu0 }
 0x66f   :  { %v423_v8 = vadd.f32 %v419_v7, %v350_v6  ;;  %v1626_v9 = vpop.f32.mrb[5].mxu0 }
 0x671   :  { %1827 = vtanh.f32 %v423_v8  ;;  %v1488_v12 = vmul.f32 -1.442695, %v423_v8 }
 0x673   :  { %1829 = vpow2.f32 %v1488_v12 }
 0x67b   :  { %v1828_v11 = vpop.eup %1827 }
 0x67c   :  { %433 = vrot.lane.b32.xlu0 %v1828_v11, %s1920_s15 }
 0x67d   :  { %v1830_v14 = vpop.eup %1829 }
 0x67e   :  { %v427_v15 = vadd.f32 1.0, %v1830_v14 }
 0x680   :  { %1831 = vrcp.f32 %v427_v15 }
 0x68a   :  { %v1832_v16 = vpop.eup %1831 }
 0x68b   :  { %v431_v20 = vmul.f32 %v1832_v16, %v337_v58 }
 0x6ee   :  { %v434_v17 = vpop.permute.xlu0 %433 }
 0x6ef   :  { %v436_v18 = vmul.f32 %v1832_v16, %v434_v17  ;;  %v766_v17 = vld [vmem:[#allocation2 + $0x18] sm:$0xf] }
 0x6f1   :  { %438 = vrot.lane.b32.xlu1 %v436_v18, %s1920_s15 }
 0x763   :  { %v439_v21 = vpop.permute.xlu1 %438 }
 0x764   :  { %v441_v22 = vadd.f32 %v439_v21, %v431_v20 }
 0x766   :  { %1833 = vtanh.f32 %v441_v22 }
 0x770   :  { %v1834_v23 = vpop.eup %1833 }
 0x771   :  { %444 = vrot.lane.b32.xlu0 %v1834_v23, %s1920_s15 }
 0x7e3   :  { %v445_v24 = vpop.permute.xlu0 %444 }
 0x7e4   :  { %v447_v25 = vmul.f32 %v1832_v16, %v445_v24 }
 0x7e6   :  { %449 = vrot.lane.b32.xlu1 %v447_v25, %s1921_s16 }
 0x858   :  { %v450_v26 = vpop.permute.xlu1 %449 }
 0x859   :  { %452 = vst.msk [vmem:[#allocation3 + $0x8] sm:$0xf] %vm242_vm2, %v450_v26  ;;  %1636 = vmatmul.mubr.msk.f32.vlgmr.msra.gmra.mrb[4].mxu1 %vm139_vm4, %v450_v26 }
 0x85a   :  { %453 = vst.msk [vmem:[#allocation3 + $0x14] sm:$0xf] %vm244_vm3, %v450_v26  ;;  %1754 = vmatpush3.bf16.msra.mxu1 %v1992_v13  ;;  %1657 = vmatprep.mubr.msk.f32.mxu1 %vm1918_vm1, %v1919_v10 }
 0x85b   :  { %1755 = vmatprep.subr.bf16.mxu1 %v1917_v5 }
 0x85e   :  { %1757 = vmatpush3.bf16.msra.mxu1 %v2007_v19 }
 0x85f   :  { %1764 = vmatprep.subr.bf16.mxu1 %v1917_v5 }
 0x92c   :  { %v523_v28 = vpop.f32.mrb[4].mxu1 }
 0x92d   :  { %v527_v29 = vadd.f32 %v523_v28, %v454_v27  ;;  %v1637_v30 = vpop.f32.mrb[5].mxu1 }
 0x92f   :  { %1835 = vtanh.f32 %v527_v29  ;;  %v1490_v32 = vmul.f32 -1.442695, %v527_v29 }
 0x931   :  { %1837 = vpow2.f32 %v1490_v32 }
 0x939   :  { %v1836_v31 = vpop.eup %1835 }
 0x93a   :  { %537 = vrot.lane.b32.xlu0 %v1836_v31, %s1920_s15 }
 0x93b   :  { %v1838_v33 = vpop.eup %1837 }
 0x93c   :  { %v531_v34 = vadd.f32 1.0, %v1838_v33 }
 0x93e   :  { %1839 = vrcp.f32 %v531_v34 }
 0x948   :  { %v1840_v35 = vpop.eup %1839 }
 0x949   :  { %v535_v38 = vmul.f32 %v1840_v35, %v441_v22 }
 0x9ac   :  { %v538_v36 = vpop.permute.xlu0 %537 }
 0x9ad   :  { %v540_v37 = vmul.f32 %v1840_v35, %v538_v36  ;;  %v870_v36 = vld [vmem:[#allocation2 + $0x1c] sm:$0xf] }
 0x9af   :  { %542 = vrot.lane.b32.xlu1 %v540_v37, %s1920_s15 }
 0xa21   :  { %v543_v39 = vpop.permute.xlu1 %542 }
 0xa22   :  { %v545_v40 = vadd.f32 %v543_v39, %v535_v38 }
 0xa24   :  { %1841 = vtanh.f32 %v545_v40 }
 0xa2e   :  { %v1842_v41 = vpop.eup %1841 }
 0xa2f   :  { %548 = vrot.lane.b32.xlu0 %v1842_v41, %s1920_s15 }
 0xaa1   :  { %v549_v42 = vpop.permute.xlu0 %548 }
 0xaa2   :  { %v551_v43 = vmul.f32 %v1840_v35, %v549_v42 }
 0xaa4   :  { %553 = vrot.lane.b32.xlu1 %v551_v43, %s1921_s16 }
 0xb16   :  { %v554_v44 = vpop.permute.xlu1 %553 }
 0xb17   :  { %556 = vst.msk [vmem:[#allocation3 + $0xc] sm:$0xf] %vm242_vm2, %v554_v44  ;;  %1647 = vmatmul.mubr.msk.f32.vlgmr.msra.gmra.mrb[6].mxu0 %vm139_vm4, %v554_v44 }
 0xb18   :  { %557 = vst.msk [vmem:[#allocation3 + $0x10] sm:$0xf] %vm244_vm3, %v554_v44  ;;  %1760 = vmatpush3.bf16.msra.mxu0 %v1992_v13  ;;  %1668 = vmatprep.mubr.msk.f32.mxu0 %vm1918_vm1, %v1919_v10 }
 0xb19   :  { %1761 = vmatprep.subr.bf16.mxu0 %v1917_v5 }
 0xb1c   :  { %1763 = vmatpush3.bf16.msra.mxu0 %v2007_v19 }
 0xbea   :  { %v627_v46 = vpop.f32.mrb[6].mxu0 }
 0xbeb   :  { %v631_v47 = vadd.f32 %v627_v46, %v558_v45  ;;  %v1648_v48 = vpop.f32.mrb[7].mxu0 }
 0xbed   :  { %1843 = vtanh.f32 %v631_v47  ;;  %v1492_v50 = vmul.f32 -1.442695, %v631_v47 }
 0xbef   :  { %1845 = vpow2.f32 %v1492_v50 }
 0xbf7   :  { %v1844_v49 = vpop.eup %1843 }
 0xbf8   :  { %641 = vrot.lane.b32.xlu0 %v1844_v49, %s1920_s15 }
 0xbf9   :  { %v1846_v51 = vpop.eup %1845 }
 0xbfa   :  { %v635_v52 = vadd.f32 1.0, %v1846_v51  ;;  %v974_v51 = vld [vmem:[%s2207_s2 + $0x68] sm:$0xff] }
 0xbfc   :  { %1847 = vrcp.f32 %v635_v52  ;;  %v975_v52 = vld [vmem:[%s2207_s2 + $0x70] sm:$0xff] }
 0xc06   :  { %v1848_v53 = vpop.eup %1847 }
 0xc07   :  { %v639_v56 = vmul.f32 %v1848_v53, %v545_v40 }
 0xc6a   :  { %v642_v54 = vpop.permute.xlu0 %641 }
 0xc6b   :  { %v644_v55 = vmul.f32 %v1848_v53, %v642_v54  ;;  %v976_v54 = vld [vmem:[%s2207_s2 + $0x78] sm:$0xff] }
 0xc6d   :  { %646 = vrot.lane.b32.xlu1 %v644_v55, %s1920_s15  ;;  %v977_v55 = vld [vmem:[%s2207_s2 + $0x80] sm:$0xff] }
 0xcdf   :  { %v647_v57 = vpop.permute.xlu1 %646 }
 0xce0   :  { %v649_v58 = vadd.f32 %v647_v57, %v639_v56  ;;  %v1774_v56 = vpack.c.bf16 %v977_v55, %v976_v54 }
 0xce2   :  { %1849 = vtanh.f32 %v649_v58 }
 0xcec   :  { %v1850_v59 = vpop.eup %1849 }
 0xced   :  { %652 = vrot.lane.b32.xlu0 %v1850_v59, %s1920_s15 }
 0xd5f   :  { %v653_v60 = vpop.permute.xlu0 %652 }
 0xd60   :  { %v655_v61 = vmul.f32 %v1848_v53, %v653_v60  ;;  %v1770_v53 = vpack.c.bf16 %v975_v52, %v974_v51 }
 0xd62   :  { %657 = vrot.lane.b32.xlu1 %v655_v61, %s1921_s16  ;;  %1771 = vmatprep.subr.bf16.mxu0 %v1770_v53 }
 0xdd4   :  { %v658_v62 = vpop.permute.xlu1 %657 }
 0xdd5   :  { %660 = vst.msk [vmem:[#allocation3 + $0x10] sm:$0xf] %vm242_vm2, %v658_v62  ;;  %1658 = vmatmul.mubr.msk.f32.vlgmr.msra.gmra.mrb[6].mxu1 %vm139_vm4, %v658_v62 }
 0xdd6   :  { %661 = vst.msk [vmem:[#allocation3 + $0xc] sm:$0xf] %vm244_vm3, %v658_v62  ;;  %1766 = vmatpush3.bf16.msra.mxu1 %v1992_v13  ;;  %1679 = vmatprep.mubr.msk.f32.mxu1 %vm1918_vm1, %v1919_v10 }
 0xdd7   :  { %1767 = vmatprep.subr.bf16.mxu1 %v1917_v5 }
 0xdda   :  { %1769 = vmatpush3.bf16.msra.mxu1 %v2007_v19 }
 0xddb   :  { %1696 = vmatprep.subr.mxu1 %v1919_v10 }
 0xea8   :  { %v731_v0 = vpop.f32.mrb[6].mxu1 }
 0xea9   :  { %v735_v1 = vadd.f32 %v731_v0, %v662_v63  ;;  %v1659_v2 = vpop.f32.mrb[7].mxu1 }
 0xeab   :  { %1851 = vtanh.f32 %v735_v1  ;;  %v1494_v4 = vmul.f32 -1.442695, %v735_v1 }
 0xead   :  { %1853 = vpow2.f32 %v1494_v4  ;;  %v1503_v4 = vld [vmem:[%s2207_s2 + $0x88] ss:$0 sm:$0xff] }
 0xeb5   :  { %v1852_v3 = vpop.eup %1851 }
 0xeb6   :  { %745 = vrot.lane.b32.xlu0 %v1852_v3, %s1920_s15 }
 0xeb7   :  { %v1854_v13 = vpop.eup %1853 }
 0xeb8   :  { %v739_v6 = vadd.f32 1.0, %v1854_v13 }
 0xeba   :  { %1855 = vrcp.f32 %v739_v6 }
 0xec4   :  { %v1856_v7 = vpop.eup %1855 }
 0xec5   :  { %v743_v19 = vmul.f32 %v1856_v7, %v649_v58 }
 0xf28   :  { %v746_v8 = vpop.permute.xlu0 %745 }
 0xf29   :  { %v748_v5 = vmul.f32 %v1856_v7, %v746_v8 }
 0xf2b   :  { %750 = vrot.lane.b32.xlu1 %v748_v5, %s1920_s15 }
 0xf9d   :  { %v751_v9 = vpop.permute.xlu1 %750 }
 0xf9e   :  { %v753_v11 = vadd.f32 %v751_v9, %v743_v19 }
 0xfa0   :  { %1857 = vtanh.f32 %v753_v11 }
 0xfaa   :  { %v1858_v12 = vpop.eup %1857 }
 0xfab   :  { %756 = vrot.lane.b32.xlu0 %v1858_v12, %s1920_s15 }
0x101d   :  { %v757_v14 = vpop.permute.xlu0 %756 }
0x101e   :  { %v759_v15 = vmul.f32 %v1856_v7, %v757_v14 }
0x1020   :  { %761 = vrot.lane.b32.xlu1 %v759_v15, %s1921_s16 }
0x1092   :  { %v762_v16 = vpop.permute.xlu1 %761 }
0x1093   :  { %764 = vst.msk [vmem:[#allocation3 + $0x14] sm:$0xf] %vm242_vm2, %v762_v16  ;;  %1669 = vmatmul.mubr.msk.f32.vlgmr.msra.gmra.mrb[8].mxu0 %vm139_vm4, %v762_v16 }
0x1094   :  { %765 = vst.msk [vmem:[#allocation3 + $0x8] sm:$0xf] %vm244_vm3, %v762_v16  ;;  %1773 = vmatpush3.bf16.msra.mxu0 %v1770_v53 }
0x1095   :  { %1775 = vmatprep.subr.bf16.mxu0 %v1774_v56 }
0x1098   :  { %1777 = vmatpush3.bf16.msra.mxu0 %v1774_v56 }
0x109a   :  { %v2153_v62 = vld [vmem:[#allocation3 + $0x10] sm:$0xff] }
0x109b   :  { %v2149_v61 = vld [vmem:[#allocation3 + $0x8] sm:$0xff] }
0x1166   :  { %v835_v18 = vpop.f32.mrb[8].mxu0 }
0x1167   :  { %v839_v20 = vadd.f32 %v835_v18, %v766_v17  ;;  %v1670_v21 = vpop.f32.mrb[9].mxu0 }
0x1169   :  { %1859 = vtanh.f32 %v839_v20  ;;  %v1496_v23 = vmul.f32 -1.442695, %v839_v20 }
0x116b   :  { %1861 = vpow2.f32 %v1496_v23 }
0x1173   :  { %v1860_v22 = vpop.eup %1859 }
0x1174   :  { %849 = vrot.lane.b32.xlu0 %v1860_v22, %s1920_s15 }
0x1175   :  { %v1862_v24 = vpop.eup %1861 }
0x1176   :  { %v843_v25 = vadd.f32 1.0, %v1862_v24 }
0x1178   :  { %1863 = vrcp.f32 %v843_v25 }
0x1182   :  { %v1864_v26 = vpop.eup %1863 }
0x1183   :  { %v847_v29 = vmul.f32 %v1864_v26, %v753_v11 }
0x11e6   :  { %v850_v27 = vpop.permute.xlu0 %849 }
0x11e7   :  { %v852_v28 = vmul.f32 %v1864_v26, %v850_v27 }
0x11e9   :  { %854 = vrot.lane.b32.xlu1 %v852_v28, %s1920_s15 }
0x125b   :  { %v855_v30 = vpop.permute.xlu1 %854 }
0x125c   :  { %v857_v31 = vadd.f32 %v855_v30, %v847_v29 }
0x125e   :  { %1865 = vtanh.f32 %v857_v31 }
0x1268   :  { %v1866_v32 = vpop.eup %1865 }
0x1269   :  { %860 = vrot.lane.b32.xlu0 %v1866_v32, %s1920_s15 }
0x12db   :  { %v861_v33 = vpop.permute.xlu0 %860 }
0x12dc   :  { %v863_v34 = vmul.f32 %v1864_v26, %v861_v33 }
0x12de   :  { %865 = vrot.lane.b32.xlu1 %v863_v34, %s1921_s16 }
0x1350   :  { %v866_v35 = vpop.permute.xlu1 %865 }
0x1351   :  { %868 = vst.msk [vmem:[#allocation3 + $0x18] sm:$0xf] %vm242_vm2, %v866_v35  ;;  %1680 = vmatmul.mubr.msk.f32.vlgmr.msra.gmra.mrb[8].mxu1 %vm139_vm4, %v866_v35 }
0x1352   :  { %869 = vst.msk [vmem:[#allocation3 + $0x4] sm:$0xf] %vm244_vm3, %v866_v35  ;;  %1698 = vmatprep.mubr.msk.f32.mxu1 %vm1918_vm1, %v1919_v10 }
0x1424   :  { %v939_v37 = vpop.f32.mrb[8].mxu1 }
0x1425   :  { %v943_v38 = vadd.f32 %v939_v37, %v870_v36  ;;  %v1681_v39 = vpop.f32.mrb[9].mxu1 }
0x1426   :  { %v1922_v39 = vmov 1  }
0x1427   :  { %1867 = vtanh.f32 %v943_v38  ;;  %v1498_v41 = vmul.f32 -1.442695, %v943_v38  ;;  %1802 = vset.pattern.permute.xlu1 %v1922_v39 }
0x1429   :  { %1869 = vpow2.f32 %v1498_v41 }
0x1431   :  { %v1868_v40 = vpop.eup %1867 }
0x1432   :  { %953 = vrot.lane.b32.xlu0 %v1868_v40, %s1920_s15  ;;  %v1923_v40 = vmov 0  }
0x1433   :  { %v1870_v42 = vpop.eup %1869  ;;  %1803 = vset.pattern.permute.xlu0 %v1923_v40 }
0x1434   :  { %v947_v43 = vadd.f32 1.0, %v1870_v42 }
0x1436   :  { %1871 = vrcp.f32 %v947_v43 }
0x1440   :  { %v1872_v44 = vpop.eup %1871 }
0x1441   :  { %v951_v47 = vmul.f32 %v1872_v44, %v857_v31 }
0x14a4   :  { %v954_v45 = vpop.permute.xlu0 %953 }
0x14a5   :  { %v956_v46 = vmul.f32 %v1872_v44, %v954_v45  ;;  %v1925_v45 = vmov 2  }
0x14a7   :  { %958 = vrot.lane.b32.xlu1 %v956_v46, %s1920_s15  ;;  %v1926_v46 = vmov 5  }
0x1519   :  { %v959_v48 = vpop.permute.xlu1 %958 }
0x151a   :  { %v961_v49 = vadd.f32 %v959_v48, %v951_v47  ;;  %v1927_v47 = vmov 4   ;;  %v1928_v48 = vmov 7  }
0x151c   :  { %1873 = vtanh.f32 %v961_v49  ;;  %v1929_v49 = vmov 6  }
0x1526   :  { %v1874_v50 = vpop.eup %1873 }
0x1527   :  { %964 = vrot.lane.b32.xlu0 %v1874_v50, %s1920_s15  ;;  %s1893_s15 = scalar_lea.vmem %s1472_s14, 128 }
0x1528   :  { %p1894_p0 = scmp.ne.s32.totalorder %s1472_s14, %s1893_s15  ;;  %p1899_p2 = scmp.lt.s32.totalorder %s1893_s15, %s1893_s15 }
0x152a   :  { %p1900_p3 = por %p1899_p2, %p1898_p1 }
0x152c   :  { %p1901_p4 = pnand %p1900_p3, %p1894_p0 }
0x1599   :  { %v965_v57 = vpop.permute.xlu0 %964 }
0x159a   :  { %v967_v58 = vmul.f32 %v1872_v44, %v965_v57  ;;  %v1924_v44 = vmov 3  }
0x159c   :  { %969 = vrot.lane.b32.xlu1 %v967_v58, %s1921_s16 }
0x160e   :  { %v970_v59 = vpop.permute.xlu1 %969 }
0x160f   :  { %972 = vst.msk [vmem:[#allocation3 + $0x1c] sm:$0xf] %vm242_vm2, %v970_v59  ;;  %vm1333_vm2 = vcmask 195584  }
0x1610   :  { %973 = vst.msk [vmem:[#allocation3] sm:$0xf] %vm244_vm3, %v970_v59  ;;  %vm1335_vm3 = vcmask 228352  }
0x1616   :  { %v2157_v63 = vld [vmem:[#allocation3 + $0x18] sm:$0xff] }
0x1617   :  { %v2145_v60 = vld [vmem:[#allocation3] sm:$0xff] }
0x1618   :  { %1690 = vmatprep.mubr.msk.f32.mxu0 %vm139_vm4, %v2145_v60 }
0x1619   :  { %1691 = vmatmul.mubr.msk.f32.vlgmr.msra.gmra.mrb[10].mxu0 %vm139_vm4, %v2149_v61 }
0x161a   :  { %1693 = vmatprep.mubr.msk.f32.mxu0 %vm139_vm4, %v2153_v62 }
0x161d   :  { %1694 = vmatmul.mubr.msk.f32.gmra.mrb[12].mxu0 %vm139_vm4, %v2157_v63 }
0x16ec   :  { %v1692_v0 = vpop.f32.mrb[10].mxu0 }
0x16ed   :  { %1875 = vtanh.f32 %v1692_v0  ;;  %v1061_v1 = vpop.f32.mrb[11].mxu0 }
0x16ee   :  { %1877 = vtanh.f32 %v1061_v1 }
0x16f0   :  { %v1695_v2 = vpop.f32.mrb[12].mxu0 }
0x16f1   :  { %1879 = vtanh.f32 %v1695_v2  ;;  %v1071_v3 = vpop.f32.mrb[13].mxu0 }
0x16f2   :  { %1881 = vtanh.f32 %v1071_v3 }
0x16f7   :  { %v1876_v13 = vpop.eup %1875 }
0x16f8   :  { %v1878_v6 = vpop.eup %1877  ;;  %v1089_v7 = vmul.f32 %v1876_v13, %v1503_v4 }
0x16f9   :  { %v1088_v8 = vmul.f32 %v1878_v6, %v1503_v4 }
0x16fa   :  { %v1096_v5 = vsel %vm1092_vm5, %v1089_v7, 0.0 }
0x16fb   :  { %v1880_v19 = vpop.eup %1879  ;;  %1097 = vadd.xlane.f32.xlu1 %v1096_v5  ;;  %v1093_v9 = vsel %vm1092_vm5, %v1088_v8, 0.0 }
0x16fc   :  { %v1882_v11 = vpop.eup %1881  ;;  %1094 = vadd.xlane.f32.xlu0 %v1093_v9  ;;  %v1091_v15 = vmul.f32 %v1880_v19, %v1503_v4 }
0x16fd   :  { %v1090_v12 = vmul.f32 %v1882_v11, %v1503_v4 }
0x16fe   :  { %v1102_v16 = vsel %vm1092_vm5, %v1091_v15, 0.0 }
0x16ff   :  { %v1099_v14 = vsel %vm1092_vm5, %v1090_v12, 0.0 }
0x1700   :  { %1100 = vadd.xlane.f32.xlu0 %v1099_v14 }
0x1704   :  { %1103 = vadd.xlane.f32.xlu0 %v1102_v16 }
0x1788   :  { %v1098_v17 = vpop.xlane.xlu1 %1097 }
0x1789   :  { %v1095_v18 = vpop.xlane.xlu0 %1094  ;;  %v1109_v21 = vrot.slane %v1098_v17, 4 }
0x178a   :  { %v1106_v20 = vrot.slane %v1095_v18, 4 }
0x178c   :  { %v1118_v22 = vsel %vm1117_vm6, %v1095_v18, %v1106_v20  ;;  %vm1350_vm6 = vcmask 1040384  }
0x178d   :  { %v1120_v23 = vsel %vm1119_vm7, %v1118_v22, %v1098_v17  ;;  %v1101_v24 = vpop.xlane.xlu0 %1100  ;;  %vm1354_vm7 = vcmask 1042432  }
0x178e   :  { %v1122_v25 = vsel %vm1121_vm8, %v1120_v23, %v1109_v21  ;;  %v1112_v26 = vrot.slane %v1101_v24, 4 }
0x178f   :  { %v1124_v27 = vsel %vm1123_vm9, %v1122_v25, %v1101_v24 }
0x1790   :  { %v1126_v28 = vsel %vm1125_vm10, %v1124_v27, %v1112_v26 }
0x1791   :  { %v1104_v29 = vpop.xlane.xlu0 %1103 }
0x1792   :  { %v1115_v30 = vrot.slane %v1104_v29, 4  ;;  %v1128_v31 = vsel %vm1127_vm11, %v1126_v28, %v1104_v29 }
0x1794   :  { %v1130_v32 = vsel %vm1129_vm12, %v1128_v31, %v1115_v30 }
0x1795   :  { %v1132_v33 = vsel %vm1131_vm13, %v1130_v32, -inf }
0x1796   :  { %1133 = vmax.xlane.f32.xlu1 %v1132_v33 }
0x1823   :  { %v1134_v34 = vpop.xlane.xlu1 %1133 }
0x1824   :  { %v1135_v35 = vsub.f32 %v1130_v32, %v1134_v34 }
0x1826   :  { %v1136_v36 = vmul.f32 1.442695, %v1135_v35 }
0x1828   :  { %1883 = vpow2.f32 %v1136_v36 }
0x1832   :  { %v1884_v37 = vpop.eup %1883 }
0x1833   :  { %v1138_v38 = vsel %vm1131_vm13, %v1884_v37, 0.0 }
0x1834   :  { %1139 = vadd.xlane.f32.xlu0 %v1138_v38 }
0x18c1   :  { %v1140_v41 = vpop.xlane.xlu0 %1139 }
0x18c2   :  { %1885 = vrcp.f32 %v1140_v41 }
0x18cc   :  { %v1886_v42 = vpop.eup %1885 }
0x18cd   :  { %v1142_v43 = vmul.f32 %v1886_v42, %v1884_v37 }
0x18cf   :  { %1145 = vperm.xlu0 %1803, %v1142_v43   ;;  %1150 = vperm.xlu1 %1802, %v1142_v43  }
0x18d3   :  { %1804 = vset.pattern.permute.xlu1 %v1924_v44 }
0x18d4   :  { %1166 = vperm.xlu1 %1804, %v1142_v43  }
0x18d8   :  { %1805 = vset.pattern.permute.xlu1 %v1925_v45 }
0x18d9   :  { %1160 = vperm.xlu1 %1805, %v1142_v43  }
0x18dd   :  { %1806 = vset.pattern.permute.xlu1 %v1926_v46 }
0x18de   :  { %1182 = vperm.xlu1 %1806, %v1142_v43  }
0x18e2   :  { %1807 = vset.pattern.permute.xlu1 %v1927_v47 }
0x18e3   :  { %1176 = vperm.xlu1 %1807, %v1142_v43  }
0x18e7   :  { %1808 = vset.pattern.permute.xlu1 %v1928_v48 }
0x18e8   :  { %1198 = vperm.xlu1 %1808, %v1142_v43  }
0x18ec   :  { %1809 = vset.pattern.permute.xlu1 %v1929_v49 }
0x18ed   :  { %1192 = vperm.xlu1 %1809, %v1142_v43  }
0x194e   :  { %v1151_v50 = vpop.permute.xlu1 %1150  ;;  %v1146_v55 = vpop.permute.xlu0 %1145 }
0x194f   :  { %v1152_v52 = vrot.slane %v1151_v50, 4  ;;  %v1148_v59 = vmul.f32 %v1146_v55, %v2145_v60 }
0x1951   :  { %v1154_v54 = vmul.f32 %v1152_v52, %v2145_v60 }
0x1953   :  { %v1167_v51 = vpop.permute.xlu1 %1166  ;;  %v1156_v56 = vrot.slane %v1154_v54, 4 }
0x1954   :  { %v1168_v57 = vrot.slane %v1167_v51, 4 }
0x1955   :  { %v1158_v2 = vadd.f32 %v1156_v56, %v1148_v59 }
0x1956   :  { %v1170_v1 = vmul.f32 %v1168_v57, %v2149_v61 }
0x1958   :  { %v1161_v53 = vpop.permute.xlu1 %1160  ;;  %v1172_v6 = vrot.slane %v1170_v1, 4 }
0x1959   :  { %v1163_v0 = vmul.f32 %v1161_v53, %v2149_v61 }
0x195b   :  { %v1164_v4 = vadd.f32 %v1163_v0, %v1158_v2 }
0x195d   :  { %v1183_v58 = vpop.permute.xlu1 %1182  ;;  %v1174_v5 = vadd.f32 %v1172_v6, %v1164_v4 }
0x195e   :  { %v1184_v13 = vrot.slane %v1183_v58, 4 }
0x1960   :  { %v1186_v8 = vmul.f32 %v1184_v13, %v2153_v62 }
0x1962   :  { %v1177_v3 = vpop.permute.xlu1 %1176  ;;  %v1188_v12 = vrot.slane %v1186_v8, 4 }
0x1963   :  { %v1179_v7 = vmul.f32 %v1177_v3, %v2153_v62  ;;  %v1207_v62 = vld [vmem:[%s2205_s0] sm:$0xff]  ;;  %s1930_s0 = smov 8  }
0x1965   :  { %v1180_v11 = vadd.f32 %v1179_v7, %v1174_v5 }
0x1967   :  { %v1199_v19 = vpop.permute.xlu1 %1198  ;;  %v1190_v15 = vadd.f32 %v1188_v12, %v1180_v11 }
0x1968   :  { %v1200_v9 = vrot.slane %v1199_v19, 4 }
0x196a   :  { %v1202_v60 = vmul.f32 %v1200_v9, %v2157_v63 }
0x196c   :  { %v1193_v14 = vpop.permute.xlu1 %1192  ;;  %v1204_v16 = vrot.slane %v1202_v60, 4 }
0x196d   :  { %v1195_v61 = vmul.f32 %v1193_v14, %v2157_v63 }
0x196f   :  { %v1196_v17 = vadd.f32 %v1195_v61, %v1190_v15 }
0x1971   :  { %v1206_v18 = vadd.f32 %v1204_v16, %v1196_v17 }
0x1973   :  { %1697 = vmatpush3.xpose.msk.msra.mxu1 %vm139_vm4, %v1206_v18 }
0x1974   :  { %1701 = vmatprep.subr.mxu1 %v1919_v10 }
0x1976   :  { %1699 = vmatmul.mubr.msk.f32.vlgmr.msra.gmra.mrb[10].mxu1 %vm139_vm4, %v1207_v62 }
0x1977   :  { %1702 = vmatpush3.msk.msra.mxu1 %vm1391_vm14, %v1206_v18  ;;  %1703 = vmatprep.mubr.msk.f32.mxu1 %vm1918_vm1, %v1919_v10  ;;  %vm1331_vm1 = vcmask 162816  }
0x1a49   :  { %v1280_v20 = vpop.f32.mrb[10].mxu1 }
0x1a4a   :  { %1887 = vtanh.f32 %v1280_v20  ;;  %v1700_v63 = vpop.f32.mrb[11].mxu1 }
0x1a54   :  { %v1888_v21 = vpop.eup %1887 }
0x1a55   :  { %v1285_v22 = vsel %vm1123_vm9, %v1888_v21, -inf }
0x1a56   :  { %1286 = vmax.xlane.f32.xlu1 %v1285_v22 }
0x1ae3   :  { %v1287_v23 = vpop.xlane.xlu1 %1286 }
0x1ae4   :  { %v1288_v24 = vsub.f32 %v1888_v21, %v1287_v23 }
0x1ae6   :  { %v1289_v25 = vmul.f32 1.442695, %v1288_v24 }
0x1ae8   :  { %1889 = vpow2.f32 %v1289_v25 }
0x1af2   :  { %v1890_v26 = vpop.eup %1889 }
0x1af3   :  { %v1291_v27 = vsel %vm1123_vm9, %v1890_v26, 0.0 }
0x1af4   :  { %1292 = vadd.xlane.f32.xlu0 %v1291_v27 }
0x1b81   :  { %v1293_v28 = vpop.xlane.xlu0 %1292 }
0x1b82   :  { %1891 = vrcp.f32 %v1293_v28 }
0x1b8c   :  { %v1892_v29 = vpop.eup %1891 }
0x1b8d   :  { %v1295_v30 = vmul.f32 %v1892_v29, %v1890_v26 }
0x1b8f   :  { %v1301_v10 = vrot.slane %v1295_v30, 2  ;;  %v1297_v31 = vrot.slane %v1295_v30, 1  ;;  %v1313_v32 = vrot.slane %v1295_v30, 5  ;;  %v1305_v33 = vrot.slane %v1295_v30, 3 }
0x1b90   :  { %v1321_v34 = vrot.slane %v1295_v30, 7  ;;  %v1309_v35 = vrot.slane %v1295_v30, 4  ;;  %v1317_v36 = vrot.slane %v1295_v30, 6 }
0x1b91   :  { %1302 = vrot.lane.b32.xlu0 %v1301_v10, %s1930_s0  ;;  %1298 = vrot.lane.b32.xlu1 %v1297_v31, %s1931_s4 }
0x1b95   :  { %1314 = vrot.lane.b32.xlu0 %v1313_v32, %s1932_s5  ;;  %1306 = vrot.lane.b32.xlu1 %v1305_v33, %s1933_s6 }
0x1b99   :  { %1322 = vrot.lane.b32.xlu0 %v1321_v34, %s1934_s7  ;;  %1310 = vrot.lane.b32.xlu1 %v1309_v35, %s1935_s8 }
0x1b9d   :  { %1318 = vrot.lane.b32.xlu1 %v1317_v36, %s1936_s9 }
0x1c03   :  { %v1299_v37 = vpop.permute.xlu1 %1298  ;;  %v1303_v38 = vpop.permute.xlu0 %1302 }
0x1c04   :  { %v1325_v39 = vsel %vm1123_vm9, %v1295_v30, %v1299_v37 }
0x1c05   :  { %v1327_v42 = vsel %vm1326_vm15, %v1325_v39, %v1303_v38 }
0x1c07   :  { %v1307_v40 = vpop.permute.xlu1 %1306  ;;  %v1315_v41 = vpop.permute.xlu0 %1314 }
0x1c08   :  { %v1329_v43 = vsel %vm1328_vm0, %v1327_v42, %v1307_v40 }
0x1c0b   :  { %v1311_v44 = vpop.permute.xlu1 %1310  ;;  %v1323_v49 = vpop.permute.xlu0 %1322 }
0x1c0c   :  { %v1330_v45 = vsel %vm1092_vm5, %v1329_v43, %v1311_v44  ;;  %vm1352_vm5 = vcmask 1041408  }
0x1c0d   :  { %v1332_v46 = vsel %vm1331_vm1, %v1330_v45, %v1315_v41 }
0x1c0f   :  { %v1319_v47 = vpop.permute.xlu1 %1318 }
0x1c10   :  { %v1334_v50 = vsel %vm1333_vm2, %v1332_v46, %v1319_v47 }
0x1c11   :  { %v1336_v51 = vsel %vm1335_vm3, %v1334_v50, %v1323_v49 }
0x1c12   :  { %v1342_v52 = vrot.slane %v1336_v51, 6  ;;  %v1338_v53 = vrot.slane %v1336_v51, 7  ;;  %v1346_v54 = vrot.slane %v1336_v51, 5 }
0x1c14   :  { %1343 = vrot.lane.b32.xlu0 %v1342_v52, %s1937_s10  ;;  %1339 = vrot.lane.b32.xlu1 %v1338_v53, %s1938_s11 }
0x1c18   :  { %1347 = vrot.lane.b32.xlu1 %v1346_v54, %s1939_s12 }
0x1c86   :  { %v1340_v55 = vpop.permute.xlu1 %1339  ;;  %v1344_v56 = vpop.permute.xlu0 %1343 }
0x1c87   :  { %v1351_v57 = vsel %vm1350_vm6, %v1336_v51, %v1340_v55 }
0x1c88   :  { %v1353_v59 = vsel %vm1352_vm5, %v1351_v57, %v1344_v56 }
0x1c8a   :  { %v1348_v58 = vpop.permute.xlu1 %1347 }
0x1c8b   :  { %v1355_v0 = vsel %vm1354_vm7, %v1353_v59, %v1348_v58 }
0x1c8c   :  { %1356 = vxpose.xlu0.b32.start.end [1/1] (short) (narrow) %v1355_v0, 8 }
0x1cb5   :  { %1810 = vset.pattern.permute.xlu0 %v1928_v48 }
0x1d0c   :  { %v1372_v1 = vpop.trf.xlu0 }
0x1d0d   :  { %1704 = vmatmul.mubr.msk.f32.vlgmr.msra.gmra.mrb[12].mxu1 %vm1123_vm9, %v1372_v1 }
0x1de0   :  { %v1460_v2 = vpop.f32.mrb[12].mxu1 }
0x1de1   :  { %1464 = vst.msk [vmem:[#allocation4] sm:$0xff] %vm139_vm4, %v1460_v2  ;;  %v1705_v3 = vpop.f32.mrb[13].mxu1 }
0x1de2   :  { %1904 = shalt.err (!%p1901_p4)
}
0x1de3   :  { %s1905_s18 = scalar_lea.hbm %s2208_s3, 128 }
0x1de4   :  { %p1906_p5 = scmp.ne.s32.totalorder %s2208_s3, %s1905_s18  ;;  %p1909_p6 = scmp.lt.u32.totalorder %s1905_s18, %s2208_s3 }
0x1de6   :  { %p1911_p7 = pnand %p1909_p6, %p1906_p5 }
0x1de8   :  { %1914 = shalt.err (!%p1911_p7)
}
0x1de9   :  { %1474 = dma.vmem_to_hbm [thread:$0]  %s1472_s14, 128, %s2208_s3, [#allocation5]  }
0x1dea   :  { %1915 = dma.done.wait [#allocation5], 128  }
0x1deb   :  { %1916 = vsyncadd [#allocation5], 4294967168 }
0x1dec   :  { %1478 = vsyncpa [#allocation5], 1 }

</bundles_post_ra>
